<compile_context>
chip_gen: v5e
topology: v5e:2x2
jax: 0.10.0
libtpu: 0.0.40
codegen_flags: <defaults>
</compile_context>

<pallas_src>
import functools

import jax
import jax.numpy as jnp
from jax.experimental import pallas as pl
from jax.experimental.pallas import tpu as pltpu

BN_EPS = 1e-5


# ------------------------------ fused kernel ------------------------------

def _fused_bottleneck_kernel(xem_ref, xeh_ref, xom_ref, xoh_ref,
                             w1_ref, w2_ref, w3_ref, wd_ref,
                             b1_ref, b2_ref, b3d_ref, o_ref):
    """One (batch, R-output-row) tile of the whole EncoderBottleneck.

    xem/xom: (1, 2R, Wo, Cin) even-/odd-column halves of x rows [2Rt, 2Rt+2R)
    xeh/xoh: (1, 1,  Wo, Cin) halo row x[2Rt-1] (top zero-pad of conv2 if t==0)
    """
    t = pl.program_id(1)
    R, Wo, Cout = o_ref.shape[1], o_ref.shape[2], o_ref.shape[3]
    Cin = xem_ref.shape[3]
    Cw = w1_ref.shape[1]
    bf = jnp.bfloat16

    w1 = w1_ref[...]                      # (Cin, Cw) bf16, BN1 scale folded
    b1 = b1_ref[...]                      # (1, Cw)   f32,  BN1 shift

    def conv1(v):                         # (..., Cin) -> (M, Cw) f32 post-ReLU
        y = jnp.dot(v.reshape(-1, Cin), w1, preferred_element_type=jnp.float32)
        return jnp.maximum(y + b1, 0.0)

    # ---- conv1 + BN1 + ReLU on the 2R "main" rows, both column parities.
    xe = xem_ref[0]                       # (2R, Wo, Cin)  x[..., even cols]
    xo = xom_ref[0]                       # (2R, Wo, Cin)  x[..., odd  cols]
    ye = conv1(xe).astype(bf).reshape(R, 2, Wo, Cw)
    yo = conv1(xo).astype(bf).reshape(R, 2, Wo, Cw)

    # ---- conv1 on the halo row above the block; zero it when it is conv2's
    #      top padding row (t == 0).
    hvalid = jnp.where(t > 0, 1.0, 0.0)
    yeh = (conv1(xeh_ref[0, 0]) * hvalid).astype(bf).reshape(1, Wo, Cw)
    yoh = (conv1(xoh_ref[0, 0]) * hvalid).astype(bf).reshape(1, Wo, Cw)

    # ---- row groups of the (zero-padded) conv1 output per conv2 row-tap ki:
    #      ki=0 -> even padded rows 0..2R-2, ki=1 -> odd rows 1..2R-1,
    #      ki=2 -> even padded rows 2..2R.   Leading-dim ops only (cheap).
    def row_groups(y4, yh):
        even_local, odd_local = y4[:, 0], y4[:, 1]        # (R, Wo, Cw) each
        if R == 1:
            g0 = yh
        else:
            g0 = jnp.concatenate([yh, odd_local[:R - 1]], axis=0)
        return (g0, even_local, odd_local)                # ki = 0, 1, 2

    ge_groups = row_groups(ye, yeh)       # feeds column-tap kj == 1
    go_groups = row_groups(yo, yoh)       # feeds column-taps kj == 0 and 2

    # ---- conv2 (3x3, stride 2, pad 1) + BN2 + ReLU:
    #      9 accumulating MXU matmuls with M = R*Wo, single f32 accumulator.
    zcol = jnp.zeros((R, 1, Cw), bf)
    acc = jnp.zeros((R * Wo, Cw), jnp.float32)
    for ki in range(3):
        ge, go = ge_groups[ki], go_groups[ki]
        if Wo == 1:
            slab0 = zcol
        else:                              # left zero-pad column, shift by one
            slab0 = jnp.concatenate([zcol, go[:, :Wo - 1, :]], axis=1)
        for kj, slab in enumerate((slab0, ge, go)):
            acc = acc + jnp.dot(slab.reshape(R * Wo, Cw), w2_ref[ki * 3 + kj],
                                preferred_element_type=jnp.float32)

    y2 = jnp.maximum(acc + b2_ref[...], 0.0).astype(bf)   # BN2 shift + ReLU

    # ---- conv3 (1x1)+BN3, downsample (1x1, s2)+BNd, residual, final ReLU.
    out = jnp.dot(y2, w3_ref[...], preferred_element_type=jnp.float32)
    xd = xe.reshape(R, 2, Wo, Cin)[:, 0]                   # x[2*oi, 2*oj, :]
    out = out + jnp.dot(xd.reshape(R * Wo, Cin), wd_ref[...],
                        preferred_element_type=jnp.float32)
    out = jnp.maximum(out + b3d_ref[...], 0.0)
    o_ref[...] = out.reshape(1, R, Wo, Cout).astype(o_ref.dtype)


def _pick_row_tile(batch, Ho, Wo):
    """Largest divisor R of Ho with matmul M = R*Wo <= ~512 rows; keep >= 2
    grid steps overall so both v7x TensorCores get work."""
    cap = max(1, 512 // max(Wo, 1))
    divs = [r for r in range(1, Ho + 1) if Ho % r == 0 and r <= cap]
    R = max(divs) if divs else 1
    if batch * (Ho // R) < 2:
        smaller = [r for r in divs if batch * (Ho // r) >= 2]
        if smaller:
            R = max(smaller)
    return R


# ----------------------------- module forward -----------------------------

def encoder_bottleneck_fwd(x_nchw, p, stride=2):
    """EncoderBottleneck.forward (eval-mode BN).  NCHW in -> NCHW out."""
    # TODO(synk): the reference module hard-codes stride=2 in conv2, so only
    #             stride=2 (the only shape-consistent setting) is supported.
    assert stride == 2, "EncoderBottleneck residual shapes only match for stride=2"
    B, Cin, H, W = x_nchw.shape
    assert H % 2 == 0 and W % 2 == 0, "stride-2 path requires even H, W"
    Ho, Wo = H // 2, W // 2
    Cw = p["w1"].shape[1]
    Cout = p["w3"].shape[1]

    # NCHW -> NHWC, cast to bf16, and split by column parity — all in one XLA
    # layout pass (same HBM traffic as the plain NHWC transpose; no xd buffer
    # and no conv1/parity intermediate is ever materialized in HBM).
    x5 = x_nchw.astype(jnp.bfloat16).reshape(B, Cin, H, Wo, 2)
    x_ec = jnp.transpose(x5[..., 0], (0, 2, 3, 1))    # (B, H, Wo, Cin) even cols
    x_oc = jnp.transpose(x5[..., 1], (0, 2, 3, 1))    # (B, H, Wo, Cin) odd  cols

    R = _pick_row_tile(B, Ho, Wo)
    grid = (B, Ho // R)

    main_spec = pl.BlockSpec((1, 2 * R, Wo, Cin), lambda b, t: (b, t, 0, 0))
    halo_spec = pl.BlockSpec(
        (1, 1, Wo, Cin), lambda b, t: (b, jnp.maximum(2 * R * t - 1, 0), 0, 0))

    out = pl.pallas_call(
        _fused_bottleneck_kernel,
        out_shape=jax.ShapeDtypeStruct((B, Ho, Wo, Cout), jnp.float32),
        grid=grid,
        in_specs=[
            main_spec, halo_spec,                               # x even cols
            main_spec, halo_spec,                               # x odd cols
            pl.BlockSpec((Cin, Cw), lambda b, t: (0, 0)),       # w1 (BN1 folded)
            pl.BlockSpec((9, Cw, Cw), lambda b, t: (0, 0, 0)),  # w2 (BN2 folded)
            pl.BlockSpec((Cw, Cout), lambda b, t: (0, 0)),      # w3 (BN3 folded)
            pl.BlockSpec((Cin, Cout), lambda b, t: (0, 0)),     # wd (BNd folded)
            pl.BlockSpec((1, Cw), lambda b, t: (0, 0)),         # BN1 shift
            pl.BlockSpec((1, Cw), lambda b, t: (0, 0)),         # BN2 shift
            pl.BlockSpec((1, Cout), lambda b, t: (0, 0)),       # BN3+BNd shift
        ],
        out_specs=pl.BlockSpec((1, R, Wo, Cout), lambda b, t: (b, t, 0, 0)),
        compiler_params=pltpu.CompilerParams(
            dimension_semantics=("parallel", "parallel"),
            vmem_limit_bytes=48 * 1024 * 1024),
    )(x_ec, x_ec, x_oc, x_oc,
      p["w1"], p["w2"], p["w3"], p["wd"], p["b1"], p["b2"], p["b3d"])

    return jnp.transpose(out, (0, 3, 1, 2))                     # NHWC -> NCHW


# ----------------------------- parameters ---------------------------------

def init_raw_params(key, in_channels, out_channels, base_width=64):
    """PyTorch-layout weights + eval-mode BN statistics."""
    width = int(out_channels * (base_width / 64))
    keys = iter(jax.random.split(key, 32))          # 20 draws below; 32 is safe

    def nrm(shape, std=0.1):
        return jax.random.normal(next(keys), shape, jnp.float32) * std

    def bn(c):
        # (gamma, beta, running_mean, running_var)
        return (1.0 + nrm((c,), 0.05), nrm((c,), 0.05),
                nrm((c,), 0.05), 1.0 + jnp.abs(nrm((c,), 0.05)))

    return dict(
        down_w=nrm((out_channels, in_channels, 1, 1)), bnd=bn(out_channels),
        conv1_w=nrm((width, in_channels, 1, 1)), bn1=bn(width),
        conv2_w=nrm((width, width, 3, 3)), bn2=bn(width),
        conv3_w=nrm((out_channels, width, 1, 1)), bn3=bn(out_channels),
    )


def _fold_bn(bn):
    g, b, m, v = bn
    s = g / jnp.sqrt(v + BN_EPS)
    return s, b - m * s


def prepare_params(raw, compute_dtype=jnp.bfloat16):
    """Fold eval-mode BN scales into (transposed, bf16) conv weights; the
    per-channel shifts stay f32 for the kernel epilogue."""
    s1, t1 = _fold_bn(raw["bn1"])
    s2, t2 = _fold_bn(raw["bn2"])
    s3, t3 = _fold_bn(raw["bn3"])
    sd, td = _fold_bn(raw["bnd"])
    width, cin = raw["conv1_w"].shape[:2]
    cout = raw["conv3_w"].shape[0]
    w1 = (raw["conv1_w"].reshape(width, cin).T * s1[None, :]).astype(compute_dtype)
    w2 = (jnp.transpose(raw["conv2_w"], (2, 3, 1, 0)).reshape(9, width, width)
          * s2[None, None, :]).astype(compute_dtype)     # w2[ki*3+kj]: (Cin_w, Cout_w)
    w3 = (raw["conv3_w"].reshape(cout, width).T * s3[None, :]).astype(compute_dtype)
    wd = (raw["down_w"].reshape(cout, cin).T * sd[None, :]).astype(compute_dtype)
    return dict(w1=w1, w2=w2, w3=w3, wd=wd,
                b1=t1.reshape(1, width).astype(jnp.float32),
                b2=t2.reshape(1, width).astype(jnp.float32),
                b3d=(t3 + td).reshape(1, cout).astype(jnp.float32))


# ----------------------------- pure-JAX reference --------------------------

def ref_forward(x_nchw, raw):
    x = jnp.transpose(x_nchw, (0, 2, 3, 1))

    def conv(h, w_torch, stride, pad):
        w = jnp.transpose(w_torch, (2, 3, 1, 0))      # OIHW -> HWIO
        return jax.lax.conv_general_dilated(
            h, w, (stride, stride), [(pad, pad), (pad, pad)],
            dimension_numbers=("NHWC", "HWIO", "NHWC"))

    def bn(h, params):
        g, b, m, v = params
        return (h - m) / jnp.sqrt(v + BN_EPS) * g + b

    xd = bn(conv(x, raw["down_w"], 2, 0), raw["bnd"])
    y = jax.nn.relu(bn(conv(x, raw["conv1_w"], 1, 0), raw["bn1"]))
    y = jax.nn.relu(bn(conv(y, raw["conv2_w"], 2, 1), raw["bn2"]))
    y = bn(conv(y, raw["conv3_w"], 1, 0), raw["bn3"])
    y = jax.nn.relu(y + xd)
    return jnp.transpose(y, (0, 3, 1, 2))


# ----------------------------------- main ----------------------------------

if __name__ == "__main__":
    B, Cin, H, W = 2, 4, 16, 16
    Cout = 8

    key = jax.random.PRNGKey(0)
    kx, kp = jax.random.split(key)
    x = jax.random.normal(kx, (B, Cin, H, W), jnp.float32)

    raw = init_raw_params(kp, Cin, Cout)
    params = prepare_params(raw)

    fwd = jax.jit(encoder_bottleneck_fwd)
    out = fwd(x, params)
    jax.block_until_ready(out)
    assert out.shape == (B, Cout, H // 2, W // 2), out.shape

    ref = jax.jit(ref_forward)(x, raw)
    jax.block_until_ready(ref)
    err = float(jnp.max(jnp.abs(out - ref)))
    # bf16 MXU operands (f32 accumulation / epilogue) vs the f32 reference.
    assert err < 3e-2, f"mismatch vs reference: max abs err = {err}"

    print("KERNEL_OK")
</pallas_src>

<mosaic_0001>
module attributes {stable_mosaic.version = 11 : i64} {
  func.func @_fused_bottleneck_kernel(%arg0: i32, %arg1: i32, %arg2: memref<1x16x8x4xbf16, #tpu.memory_space<vmem>>, %arg3: memref<1x1x8x4xbf16, #tpu.memory_space<vmem>>, %arg4: memref<1x16x8x4xbf16, #tpu.memory_space<vmem>>, %arg5: memref<1x1x8x4xbf16, #tpu.memory_space<vmem>>, %arg6: memref<4x8xbf16, #tpu.memory_space<vmem>>, %arg7: memref<9x8x8xbf16, #tpu.memory_space<vmem>>, %arg8: memref<8x8xbf16, #tpu.memory_space<vmem>>, %arg9: memref<4x8xbf16, #tpu.memory_space<vmem>>, %arg10: memref<1x8xf32, #tpu.memory_space<vmem>>, %arg11: memref<1x8xf32, #tpu.memory_space<vmem>>, %arg12: memref<1x8xf32, #tpu.memory_space<vmem>>, %arg13: memref<1x8x8x8xf32, #tpu.memory_space<vmem>>) attributes {dimension_semantics = [#tpu.dimension_semantics<parallel>, #tpu.dimension_semantics<parallel>], iteration_bounds = array<i64: 2, 1>, scalar_prefetch = 0 : i64, scratch_operands = 0 : i64, tpu.core_type = #tpu.core_type<tc>, window_params = [{transform_indices = @transform_0, window_bounds = array<i64: 1, 16, 8, 4>}, {transform_indices = @transform_1, window_bounds = array<i64: 1, 1, 8, 4>}, {transform_indices = @transform_2, window_bounds = array<i64: 1, 16, 8, 4>}, {transform_indices = @transform_3, window_bounds = array<i64: 1, 1, 8, 4>}, {pipeline_mode = #tpu.pipeline_mode<synchronous>, transform_indices = @transform_4, window_bounds = array<i64: 4, 8>}, {pipeline_mode = #tpu.pipeline_mode<synchronous>, transform_indices = @transform_5, window_bounds = array<i64: 9, 8, 8>}, {pipeline_mode = #tpu.pipeline_mode<synchronous>, transform_indices = @transform_6, window_bounds = array<i64: 8, 8>}, {pipeline_mode = #tpu.pipeline_mode<synchronous>, transform_indices = @transform_7, window_bounds = array<i64: 4, 8>}, {pipeline_mode = #tpu.pipeline_mode<synchronous>, transform_indices = @transform_8, window_bounds = array<i64: 1, 8>}, {pipeline_mode = #tpu.pipeline_mode<synchronous>, transform_indices = @transform_9, window_bounds = array<i64: 1, 8>}, {pipeline_mode = #tpu.pipeline_mode<synchronous>, transform_indices = @transform_10, window_bounds = array<i64: 1, 8>}, {transform_indices = @transform_11, window_bounds = array<i64: 1, 8, 8, 8>}]} {
    %c0 = arith.constant 0 : index
    %c0_0 = arith.constant 0 : index
    %0 = vector.load %arg6[%c0, %c0_0] : memref<4x8xbf16, #tpu.memory_space<vmem>>, vector<4x8xbf16>
    %c0_1 = arith.constant 0 : index
    %c0_2 = arith.constant 0 : index
    %1 = vector.load %arg10[%c0_1, %c0_2] : memref<1x8xf32, #tpu.memory_space<vmem>>, vector<1x8xf32>
    %c0_3 = arith.constant 0 : index
    %c0_4 = arith.constant 0 : index
    %c0_5 = arith.constant 0 : index
    %c0_6 = arith.constant 0 : index
    %2 = vector.load %arg2[%c0_3, %c0_4, %c0_5, %c0_6] : memref<1x16x8x4xbf16, #tpu.memory_space<vmem>>, vector<1x16x8x4xbf16>
    %3 = vector.shape_cast %2 : vector<1x16x8x4xbf16> to vector<16x8x4xbf16>
    %c0_7 = arith.constant 0 : index
    %c0_8 = arith.constant 0 : index
    %c0_9 = arith.constant 0 : index
    %c0_10 = arith.constant 0 : index
    %4 = vector.load %arg4[%c0_7, %c0_8, %c0_9, %c0_10] : memref<1x16x8x4xbf16, #tpu.memory_space<vmem>>, vector<1x16x8x4xbf16>
    %5 = vector.shape_cast %4 : vector<1x16x8x4xbf16> to vector<16x8x4xbf16>
    %6 = vector.shape_cast %3 : vector<16x8x4xbf16> to vector<128x4xbf16>
    %cst = arith.constant dense<0.000000e+00> : vector<128x8xf32>
    %7 = tpu.matmul %6, %0, %cst {dimension_numbers = #tpu.dot_dimension_numbers<[1], [0], [0], [1], [0, 0, 1, 1], [], []>} : vector<128x4xbf16>, vector<4x8xbf16>, vector<128x8xf32> -> vector<128x8xf32>
    %8 = vector.broadcast %1 : vector<1x8xf32> to vector<128x8xf32>
    %9 = arith.addf %7, %8 : vector<128x8xf32>
    %cst_11 = arith.constant 0.000000e+00 : f32
    %10 = vector.broadcast %cst_11 : f32 to vector<128x8xf32>
    %11 = arith.maximumf %9, %10 : vector<128x8xf32>
    %12 = arith.truncf %11 : vector<128x8xf32> to vector<128x8xbf16>
    %13 = vector.shape_cast %12 : vector<128x8xbf16> to vector<8x2x8x8xbf16>
    %14 = vector.shape_cast %5 : vector<16x8x4xbf16> to vector<128x4xbf16>
    %cst_12 = arith.constant dense<0.000000e+00> : vector<128x8xf32>
    %15 = tpu.matmul %14, %0, %cst_12 {dimension_numbers = #tpu.dot_dimension_numbers<[1], [0], [0], [1], [0, 0, 1, 1], [], []>} : vector<128x4xbf16>, vector<4x8xbf16>, vector<128x8xf32> -> vector<128x8xf32>
    %16 = vector.broadcast %1 : vector<1x8xf32> to vector<128x8xf32>
    %17 = arith.addf %15, %16 : vector<128x8xf32>
    %cst_13 = arith.constant 0.000000e+00 : f32
    %18 = vector.broadcast %cst_13 : f32 to vector<128x8xf32>
    %19 = arith.maximumf %17, %18 : vector<128x8xf32>
    %20 = arith.truncf %19 : vector<128x8xf32> to vector<128x8xbf16>
    %21 = vector.shape_cast %20 : vector<128x8xbf16> to vector<8x2x8x8xbf16>
    %c0_i32 = arith.constant 0 : i32
    %22 = arith.cmpi sgt, %arg1, %c0_i32 : i32
    %cst_14 = arith.constant 1.000000e+00 : f32
    %cst_15 = arith.constant 0.000000e+00 : f32
    %23 = arith.select %22, %cst_14, %cst_15 : f32
    %c0_16 = arith.constant 0 : index
    %c0_17 = arith.constant 0 : index
    %c0_18 = arith.constant 0 : index
    %c0_19 = arith.constant 0 : index
    %24 = vector.load %arg3[%c0_16, %c0_17, %c0_18, %c0_19] : memref<1x1x8x4xbf16, #tpu.memory_space<vmem>>, vector<1x1x8x4xbf16>
    %25 = vector.shape_cast %24 : vector<1x1x8x4xbf16> to vector<8x4xbf16>
    %cst_20 = arith.constant dense<0.000000e+00> : vector<8x8xf32>
    %26 = tpu.matmul %25, %0, %cst_20 {dimension_numbers = #tpu.dot_dimension_numbers<[1], [0], [0], [1], [0, 0, 1, 1], [], []>} : vector<8x4xbf16>, vector<4x8xbf16>, vector<8x8xf32> -> vector<8x8xf32>
    %27 = vector.broadcast %1 : vector<1x8xf32> to vector<8x8xf32>
    %28 = arith.addf %26, %27 : vector<8x8xf32>
    %cst_21 = arith.constant 0.000000e+00 : f32
    %29 = vector.broadcast %cst_21 : f32 to vector<8x8xf32>
    %30 = arith.maximumf %28, %29 : vector<8x8xf32>
    %31 = vector.broadcast %23 : f32 to vector<8x8xf32>
    %32 = arith.mulf %30, %31 : vector<8x8xf32>
    %33 = arith.truncf %32 : vector<8x8xf32> to vector<8x8xbf16>
    %34 = vector.shape_cast %33 : vector<8x8xbf16> to vector<1x8x8xbf16>
    %c0_22 = arith.constant 0 : index
    %c0_23 = arith.constant 0 : index
    %c0_24 = arith.constant 0 : index
    %c0_25 = arith.constant 0 : index
    %35 = vector.load %arg5[%c0_22, %c0_23, %c0_24, %c0_25] : memref<1x1x8x4xbf16, #tpu.memory_space<vmem>>, vector<1x1x8x4xbf16>
    %36 = vector.shape_cast %35 : vector<1x1x8x4xbf16> to vector<8x4xbf16>
    %cst_26 = arith.constant dense<0.000000e+00> : vector<8x8xf32>
    %37 = tpu.matmul %36, %0, %cst_26 {dimension_numbers = #tpu.dot_dimension_numbers<[1], [0], [0], [1], [0, 0, 1, 1], [], []>} : vector<8x4xbf16>, vector<4x8xbf16>, vector<8x8xf32> -> vector<8x8xf32>
    %38 = vector.broadcast %1 : vector<1x8xf32> to vector<8x8xf32>
    %39 = arith.addf %37, %38 : vector<8x8xf32>
    %cst_27 = arith.constant 0.000000e+00 : f32
    %40 = vector.broadcast %cst_27 : f32 to vector<8x8xf32>
    %41 = arith.maximumf %39, %40 : vector<8x8xf32>
    %42 = vector.broadcast %23 : f32 to vector<8x8xf32>
    %43 = arith.mulf %41, %42 : vector<8x8xf32>
    %44 = arith.truncf %43 : vector<8x8xf32> to vector<8x8xbf16>
    %45 = vector.shape_cast %44 : vector<8x8xbf16> to vector<1x8x8xbf16>
    %46 = vector.extract_strided_slice %13 {offsets = [0, 0, 0, 0], sizes = [8, 1, 8, 8], strides = [1, 1, 1, 1]} : vector<8x2x8x8xbf16> to vector<8x1x8x8xbf16>
    %47 = vector.shape_cast %46 : vector<8x1x8x8xbf16> to vector<8x8x8xbf16>
    %48 = vector.extract_strided_slice %13 {offsets = [0, 1, 0, 0], sizes = [8, 1, 8, 8], strides = [1, 1, 1, 1]} : vector<8x2x8x8xbf16> to vector<8x1x8x8xbf16>
    %49 = vector.shape_cast %48 : vector<8x1x8x8xbf16> to vector<8x8x8xbf16>
    %50 = vector.extract_strided_slice %49 {offsets = [0, 0, 0], sizes = [7, 8, 8], strides = [1, 1, 1]} : vector<8x8x8xbf16> to vector<7x8x8xbf16>
    %51 = tpu.concatenate %34, %50 in 0 : vector<1x8x8xbf16>, vector<7x8x8xbf16> -> vector<8x8x8xbf16>
    %52 = vector.extract_strided_slice %21 {offsets = [0, 0, 0, 0], sizes = [8, 1, 8, 8], strides = [1, 1, 1, 1]} : vector<8x2x8x8xbf16> to vector<8x1x8x8xbf16>
    %53 = vector.shape_cast %52 : vector<8x1x8x8xbf16> to vector<8x8x8xbf16>
    %54 = vector.extract_strided_slice %21 {offsets = [0, 1, 0, 0], sizes = [8, 1, 8, 8], strides = [1, 1, 1, 1]} : vector<8x2x8x8xbf16> to vector<8x1x8x8xbf16>
    %55 = vector.shape_cast %54 : vector<8x1x8x8xbf16> to vector<8x8x8xbf16>
    %56 = vector.extract_strided_slice %55 {offsets = [0, 0, 0], sizes = [7, 8, 8], strides = [1, 1, 1]} : vector<8x8x8xbf16> to vector<7x8x8xbf16>
    %57 = tpu.concatenate %45, %56 in 0 : vector<1x8x8xbf16>, vector<7x8x8xbf16> -> vector<8x8x8xbf16>
    %cst_28 = arith.constant 0.000000e+00 : bf16
    %58 = vector.broadcast %cst_28 : bf16 to vector<8x1x8xbf16>
    %cst_29 = arith.constant 0.000000e+00 : f32
    %59 = vector.broadcast %cst_29 : f32 to vector<64x8xf32>
    %60 = vector.extract_strided_slice %57 {offsets = [0, 0, 0], sizes = [8, 7, 8], strides = [1, 1, 1]} : vector<8x8x8xbf16> to vector<8x7x8xbf16>
    %61 = tpu.concatenate %58, %60 in 1 : vector<8x1x8xbf16>, vector<8x7x8xbf16> -> vector<8x8x8xbf16>
    %62 = vector.shape_cast %61 : vector<8x8x8xbf16> to vector<64x8xbf16>
    %c0_30 = arith.constant 0 : index
    %c0_31 = arith.constant 0 : index
    %c0_32 = arith.constant 0 : index
    %63 = vector.load %arg7[%c0_30, %c0_31, %c0_32] : memref<9x8x8xbf16, #tpu.memory_space<vmem>>, vector<1x8x8xbf16>
    %64 = vector.shape_cast %63 : vector<1x8x8xbf16> to vector<8x8xbf16>
    %cst_33 = arith.constant dense<0.000000e+00> : vector<64x8xf32>
    %65 = tpu.matmul %62, %64, %cst_33 {dimension_numbers = #tpu.dot_dimension_numbers<[1], [0], [0], [1], [0, 0, 1, 1], [], []>} : vector<64x8xbf16>, vector<8x8xbf16>, vector<64x8xf32> -> vector<64x8xf32>
    %66 = arith.addf %59, %65 : vector<64x8xf32>
    %67 = vector.shape_cast %51 : vector<8x8x8xbf16> to vector<64x8xbf16>
    %c1 = arith.constant 1 : index
    %c0_34 = arith.constant 0 : index
    %c0_35 = arith.constant 0 : index
    %68 = vector.load %arg7[%c1, %c0_34, %c0_35] : memref<9x8x8xbf16, #tpu.memory_space<vmem>>, vector<1x8x8xbf16>
    %69 = vector.shape_cast %68 : vector<1x8x8xbf16> to vector<8x8xbf16>
    %cst_36 = arith.constant dense<0.000000e+00> : vector<64x8xf32>
    %70 = tpu.matmul %67, %69, %cst_36 {dimension_numbers = #tpu.dot_dimension_numbers<[1], [0], [0], [1], [0, 0, 1, 1], [], []>} : vector<64x8xbf16>, vector<8x8xbf16>, vector<64x8xf32> -> vector<64x8xf32>
    %71 = arith.addf %66, %70 : vector<64x8xf32>
    %72 = vector.shape_cast %57 : vector<8x8x8xbf16> to vector<64x8xbf16>
    %c2 = arith.constant 2 : index
    %c0_37 = arith.constant 0 : index
    %c0_38 = arith.constant 0 : index
    %73 = vector.load %arg7[%c2, %c0_37, %c0_38] : memref<9x8x8xbf16, #tpu.memory_space<vmem>>, vector<1x8x8xbf16>
    %74 = vector.shape_cast %73 : vector<1x8x8xbf16> to vector<8x8xbf16>
    %cst_39 = arith.constant dense<0.000000e+00> : vector<64x8xf32>
    %75 = tpu.matmul %72, %74, %cst_39 {dimension_numbers = #tpu.dot_dimension_numbers<[1], [0], [0], [1], [0, 0, 1, 1], [], []>} : vector<64x8xbf16>, vector<8x8xbf16>, vector<64x8xf32> -> vector<64x8xf32>
    %76 = arith.addf %71, %75 : vector<64x8xf32>
    %77 = vector.extract_strided_slice %53 {offsets = [0, 0, 0], sizes = [8, 7, 8], strides = [1, 1, 1]} : vector<8x8x8xbf16> to vector<8x7x8xbf16>
    %78 = tpu.concatenate %58, %77 in 1 : vector<8x1x8xbf16>, vector<8x7x8xbf16> -> vector<8x8x8xbf16>
    %79 = vector.shape_cast %78 : vector<8x8x8xbf16> to vector<64x8xbf16>
    %c3 = arith.constant 3 : index
    %c0_40 = arith.constant 0 : index
    %c0_41 = arith.constant 0 : index
    %80 = vector.load %arg7[%c3, %c0_40, %c0_41] : memref<9x8x8xbf16, #tpu.memory_space<vmem>>, vector<1x8x8xbf16>
    %81 = vector.shape_cast %80 : vector<1x8x8xbf16> to vector<8x8xbf16>
    %cst_42 = arith.constant dense<0.000000e+00> : vector<64x8xf32>
    %82 = tpu.matmul %79, %81, %cst_42 {dimension_numbers = #tpu.dot_dimension_numbers<[1], [0], [0], [1], [0, 0, 1, 1], [], []>} : vector<64x8xbf16>, vector<8x8xbf16>, vector<64x8xf32> -> vector<64x8xf32>
    %83 = arith.addf %76, %82 : vector<64x8xf32>
    %84 = vector.shape_cast %47 : vector<8x8x8xbf16> to vector<64x8xbf16>
    %c4 = arith.constant 4 : index
    %c0_43 = arith.constant 0 : index
    %c0_44 = arith.constant 0 : index
    %85 = vector.load %arg7[%c4, %c0_43, %c0_44] : memref<9x8x8xbf16, #tpu.memory_space<vmem>>, vector<1x8x8xbf16>
    %86 = vector.shape_cast %85 : vector<1x8x8xbf16> to vector<8x8xbf16>
    %cst_45 = arith.constant dense<0.000000e+00> : vector<64x8xf32>
    %87 = tpu.matmul %84, %86, %cst_45 {dimension_numbers = #tpu.dot_dimension_numbers<[1], [0], [0], [1], [0, 0, 1, 1], [], []>} : vector<64x8xbf16>, vector<8x8xbf16>, vector<64x8xf32> -> vector<64x8xf32>
    %88 = arith.addf %83, %87 : vector<64x8xf32>
    %89 = vector.shape_cast %53 : vector<8x8x8xbf16> to vector<64x8xbf16>
    %c5 = arith.constant 5 : index
    %c0_46 = arith.constant 0 : index
    %c0_47 = arith.constant 0 : index
    %90 = vector.load %arg7[%c5, %c0_46, %c0_47] : memref<9x8x8xbf16, #tpu.memory_space<vmem>>, vector<1x8x8xbf16>
    %91 = vector.shape_cast %90 : vector<1x8x8xbf16> to vector<8x8xbf16>
    %cst_48 = arith.constant dense<0.000000e+00> : vector<64x8xf32>
    %92 = tpu.matmul %89, %91, %cst_48 {dimension_numbers = #tpu.dot_dimension_numbers<[1], [0], [0], [1], [0, 0, 1, 1], [], []>} : vector<64x8xbf16>, vector<8x8xbf16>, vector<64x8xf32> -> vector<64x8xf32>
    %93 = arith.addf %88, %92 : vector<64x8xf32>
    %94 = vector.extract_strided_slice %55 {offsets = [0, 0, 0], sizes = [8, 7, 8], strides = [1, 1, 1]} : vector<8x8x8xbf16> to vector<8x7x8xbf16>
    %95 = tpu.concatenate %58, %94 in 1 : vector<8x1x8xbf16>, vector<8x7x8xbf16> -> vector<8x8x8xbf16>
    %96 = vector.shape_cast %95 : vector<8x8x8xbf16> to vector<64x8xbf16>
    %c6 = arith.constant 6 : index
    %c0_49 = arith.constant 0 : index
    %c0_50 = arith.constant 0 : index
    %97 = vector.load %arg7[%c6, %c0_49, %c0_50] : memref<9x8x8xbf16, #tpu.memory_space<vmem>>, vector<1x8x8xbf16>
    %98 = vector.shape_cast %97 : vector<1x8x8xbf16> to vector<8x8xbf16>
    %cst_51 = arith.constant dense<0.000000e+00> : vector<64x8xf32>
    %99 = tpu.matmul %96, %98, %cst_51 {dimension_numbers = #tpu.dot_dimension_numbers<[1], [0], [0], [1], [0, 0, 1, 1], [], []>} : vector<64x8xbf16>, vector<8x8xbf16>, vector<64x8xf32> -> vector<64x8xf32>
    %100 = arith.addf %93, %99 : vector<64x8xf32>
    %101 = vector.shape_cast %49 : vector<8x8x8xbf16> to vector<64x8xbf16>
    %c7 = arith.constant 7 : index
    %c0_52 = arith.constant 0 : index
    %c0_53 = arith.constant 0 : index
    %102 = vector.load %arg7[%c7, %c0_52, %c0_53] : memref<9x8x8xbf16, #tpu.memory_space<vmem>>, vector<1x8x8xbf16>
    %103 = vector.shape_cast %102 : vector<1x8x8xbf16> to vector<8x8xbf16>
    %cst_54 = arith.constant dense<0.000000e+00> : vector<64x8xf32>
    %104 = tpu.matmul %101, %103, %cst_54 {dimension_numbers = #tpu.dot_dimension_numbers<[1], [0], [0], [1], [0, 0, 1, 1], [], []>} : vector<64x8xbf16>, vector<8x8xbf16>, vector<64x8xf32> -> vector<64x8xf32>
    %105 = arith.addf %100, %104 : vector<64x8xf32>
    %106 = vector.shape_cast %55 : vector<8x8x8xbf16> to vector<64x8xbf16>
    %c8 = arith.constant 8 : index
    %c0_55 = arith.constant 0 : index
    %c0_56 = arith.constant 0 : index
    %107 = vector.load %arg7[%c8, %c0_55, %c0_56] : memref<9x8x8xbf16, #tpu.memory_space<vmem>>, vector<1x8x8xbf16>
    %108 = vector.shape_cast %107 : vector<1x8x8xbf16> to vector<8x8xbf16>
    %cst_57 = arith.constant dense<0.000000e+00> : vector<64x8xf32>
    %109 = tpu.matmul %106, %108, %cst_57 {dimension_numbers = #tpu.dot_dimension_numbers<[1], [0], [0], [1], [0, 0, 1, 1], [], []>} : vector<64x8xbf16>, vector<8x8xbf16>, vector<64x8xf32> -> vector<64x8xf32>
    %110 = arith.addf %105, %109 : vector<64x8xf32>
    %c0_58 = arith.constant 0 : index
    %c0_59 = arith.constant 0 : index
    %111 = vector.load %arg11[%c0_58, %c0_59] : memref<1x8xf32, #tpu.memory_space<vmem>>, vector<1x8xf32>
    %112 = vector.broadcast %111 : vector<1x8xf32> to vector<64x8xf32>
    %113 = arith.addf %110, %112 : vector<64x8xf32>
    %cst_60 = arith.constant 0.000000e+00 : f32
    %114 = vector.broadcast %cst_60 : f32 to vector<64x8xf32>
    %115 = arith.maximumf %113, %114 : vector<64x8xf32>
    %116 = arith.truncf %115 : vector<64x8xf32> to vector<64x8xbf16>
    %c0_61 = arith.constant 0 : index
    %c0_62 = arith.constant 0 : index
    %117 = vector.load %arg8[%c0_61, %c0_62] : memref<8x8xbf16, #tpu.memory_space<vmem>>, vector<8x8xbf16>
    %cst_63 = arith.constant dense<0.000000e+00> : vector<64x8xf32>
    %118 = tpu.matmul %116, %117, %cst_63 {dimension_numbers = #tpu.dot_dimension_numbers<[1], [0], [0], [1], [0, 0, 1, 1], [], []>} : vector<64x8xbf16>, vector<8x8xbf16>, vector<64x8xf32> -> vector<64x8xf32>
    %119 = vector.shape_cast %3 : vector<16x8x4xbf16> to vector<8x2x8x4xbf16>
    %120 = vector.extract_strided_slice %119 {offsets = [0, 0, 0, 0], sizes = [8, 1, 8, 4], strides = [1, 1, 1, 1]} : vector<8x2x8x4xbf16> to vector<8x1x8x4xbf16>
    %121 = vector.shape_cast %120 : vector<8x1x8x4xbf16> to vector<8x8x4xbf16>
    %122 = vector.shape_cast %121 : vector<8x8x4xbf16> to vector<64x4xbf16>
    %c0_64 = arith.constant 0 : index
    %c0_65 = arith.constant 0 : index
    %123 = vector.load %arg9[%c0_64, %c0_65] : memref<4x8xbf16, #tpu.memory_space<vmem>>, vector<4x8xbf16>
    %cst_66 = arith.constant dense<0.000000e+00> : vector<64x8xf32>
    %124 = tpu.matmul %122, %123, %cst_66 {dimension_numbers = #tpu.dot_dimension_numbers<[1], [0], [0], [1], [0, 0, 1, 1], [], []>} : vector<64x4xbf16>, vector<4x8xbf16>, vector<64x8xf32> -> vector<64x8xf32>
    %125 = arith.addf %118, %124 : vector<64x8xf32>
    %c0_67 = arith.constant 0 : index
    %c0_68 = arith.constant 0 : index
    %126 = vector.load %arg12[%c0_67, %c0_68] : memref<1x8xf32, #tpu.memory_space<vmem>>, vector<1x8xf32>
    %127 = vector.broadcast %126 : vector<1x8xf32> to vector<64x8xf32>
    %128 = arith.addf %125, %127 : vector<64x8xf32>
    %cst_69 = arith.constant 0.000000e+00 : f32
    %129 = vector.broadcast %cst_69 : f32 to vector<64x8xf32>
    %130 = arith.maximumf %128, %129 : vector<64x8xf32>
    %131 = vector.shape_cast %130 : vector<64x8xf32> to vector<1x8x8x8xf32>
    %c0_70 = arith.constant 0 : index
    %c0_71 = arith.constant 0 : index
    %c0_72 = arith.constant 0 : index
    %c0_73 = arith.constant 0 : index
    %132 = vector.load %arg13[%c0_70, %c0_71, %c0_72, %c0_73] : memref<1x8x8x8xf32, #tpu.memory_space<vmem>>, vector<1x8x8x8xf32>
    tpu.vector_store %arg13[%c0_70, %c0_71, %c0_72, %c0_73], %131 {strides = array<i32>} : memref<1x8x8x8xf32, #tpu.memory_space<vmem>>, vector<1x8x8x8xf32>,
    return
  }
  func.func @transform_0(%arg0: i32, %arg1: i32) -> (i32, i32, i32, i32) {
    %c0_i32 = arith.constant 0 : i32
    %c0_i32_0 = arith.constant 0 : i32
    %c0_i32_1 = arith.constant 0 : i32
    return %arg0, %arg1, %c0_i32, %c0_i32_0 : i32, i32, i32, i32
  }
  func.func @transform_1(%arg0: i32, %arg1: i32) -> (i32, i32, i32, i32) {
    %c16_i32 = arith.constant 16 : i32
    %0 = arith.muli %c16_i32, %arg1 : i32
    %c1_i32 = arith.constant 1 : i32
    %1 = arith.subi %0, %c1_i32 : i32
    %c0_i32 = arith.constant 0 : i32
    %2 = arith.maxsi %1, %c0_i32 : i32
    %c0_i32_0 = arith.constant 0 : i32
    %c0_i32_1 = arith.constant 0 : i32
    %c0_i32_2 = arith.constant 0 : i32
    return %arg0, %2, %c0_i32_0, %c0_i32_1 : i32, i32, i32, i32
  }
  func.func @transform_2(%arg0: i32, %arg1: i32) -> (i32, i32, i32, i32) {
    %c0_i32 = arith.constant 0 : i32
    %c0_i32_0 = arith.constant 0 : i32
    %c0_i32_1 = arith.constant 0 : i32
    return %arg0, %arg1, %c0_i32, %c0_i32_0 : i32, i32, i32, i32
  }
  func.func @transform_3(%arg0: i32, %arg1: i32) -> (i32, i32, i32, i32) {
    %c16_i32 = arith.constant 16 : i32
    %0 = arith.muli %c16_i32, %arg1 : i32
    %c1_i32 = arith.constant 1 : i32
    %1 = arith.subi %0, %c1_i32 : i32
    %c0_i32 = arith.constant 0 : i32
    %2 = arith.maxsi %1, %c0_i32 : i32
    %c0_i32_0 = arith.constant 0 : i32
    %c0_i32_1 = arith.constant 0 : i32
    %c0_i32_2 = arith.constant 0 : i32
    return %arg0, %2, %c0_i32_0, %c0_i32_1 : i32, i32, i32, i32
  }
  func.func @transform_4(%arg0: i32, %arg1: i32) -> (i32, i32) {
    %c0_i32 = arith.constant 0 : i32
    %c0_i32_0 = arith.constant 0 : i32
    %c0_i32_1 = arith.constant 0 : i32
    return %c0_i32, %c0_i32_0 : i32, i32
  }
  func.func @transform_5(%arg0: i32, %arg1: i32) -> (i32, i32, i32) {
    %c0_i32 = arith.constant 0 : i32
    %c0_i32_0 = arith.constant 0 : i32
    %c0_i32_1 = arith.constant 0 : i32
    %c0_i32_2 = arith.constant 0 : i32
    return %c0_i32, %c0_i32_0, %c0_i32_1 : i32, i32, i32
  }
  func.func @transform_6(%arg0: i32, %arg1: i32) -> (i32, i32) {
    %c0_i32 = arith.constant 0 : i32
    %c0_i32_0 = arith.constant 0 : i32
    %c0_i32_1 = arith.constant 0 : i32
    return %c0_i32, %c0_i32_0 : i32, i32
  }
  func.func @transform_7(%arg0: i32, %arg1: i32) -> (i32, i32) {
    %c0_i32 = arith.constant 0 : i32
    %c0_i32_0 = arith.constant 0 : i32
    %c0_i32_1 = arith.constant 0 : i32
    return %c0_i32, %c0_i32_0 : i32, i32
  }
  func.func @transform_8(%arg0: i32, %arg1: i32) -> (i32, i32) {
    %c0_i32 = arith.constant 0 : i32
    %c0_i32_0 = arith.constant 0 : i32
    %c0_i32_1 = arith.constant 0 : i32
    return %c0_i32, %c0_i32_0 : i32, i32
  }
  func.func @transform_9(%arg0: i32, %arg1: i32) -> (i32, i32) {
    %c0_i32 = arith.constant 0 : i32
    %c0_i32_0 = arith.constant 0 : i32
    %c0_i32_1 = arith.constant 0 : i32
    return %c0_i32, %c0_i32_0 : i32, i32
  }
  func.func @transform_10(%arg0: i32, %arg1: i32) -> (i32, i32) {
    %c0_i32 = arith.constant 0 : i32
    %c0_i32_0 = arith.constant 0 : i32
    %c0_i32_1 = arith.constant 0 : i32
    return %c0_i32, %c0_i32_0 : i32, i32
  }
  func.func @transform_11(%arg0: i32, %arg1: i32) -> (i32, i32, i32, i32) {
    %c0_i32 = arith.constant 0 : i32
    %c0_i32_0 = arith.constant 0 : i32
    %c0_i32_1 = arith.constant 0 : i32
    return %arg0, %arg1, %c0_i32, %c0_i32_0 : i32, i32, i32, i32
  }
}

</mosaic_0001>

<bundles_post_ra>
// kernel: encoder_bottleneck_fwd.1
= control target key start
LH: loop header
LB: loop body
LE: loop exit
PB: predicated region body
PF: predicated region fallthrough
CT: control target
= control target key end

     0   :  { %s2327_s17 = smov 0   ;;  %s2329_s18 = smov 0   ;;  %s2824_s0 = inlined_call_operand.vmem [shape: bf16[2,16,8,4], index: 0, kind: input, shape index: {}, may-alias: {0,1}]   ;;  %s2825_s1 = inlined_call_operand.vmem [shape: bf16[2,16,8,4], index: 1, kind: input, shape index: {}, may-alias: {0,1}]   ;;  %s2826_s2 = inlined_call_operand.vmem [shape: bf16[2,16,8,4], index: 2, kind: input, shape index: {}, may-alias: {2,3}]   ;;  %s2827_s3 = inlined_call_operand.vmem [shape: bf16[2,16,8,4], index: 3, kind: input, shape index: {}, may-alias: {2,3}]   ;;  %s2828_s4 = inlined_call_operand.vmem [shape: bf16[4,8], index: 4, kind: input, shape index: {}]   ;;  %s2829_s5 = inlined_call_operand.vmem [shape: bf16[9,8,8], index: 5, kind: input, shape index: {}]   ;;  %s2830_s6 = inlined_call_operand.vmem [shape: bf16[8,8], index: 6, kind: input, shape index: {}]   ;;  %s2831_s7 = inlined_call_operand.vmem [shape: bf16[4,8], index: 7, kind: input, shape index: {}]   ;;  %s2832_s8 = inlined_call_operand.vmem [shape: f32[1,8], index: 8, kind: input, shape index: {}]   ;;  %s2833_s9 = inlined_call_operand.vmem [shape: f32[1,8], index: 9, kind: input, shape index: {}]   ;;  %s2834_s10 = inlined_call_operand.vmem [shape: f32[1,8], index: 10, kind: input, shape index: {}]   ;;  %s2835_s11 = inlined_call_operand.vmem [shape: f32[2,8,8,8], index: 11, kind: output, shape index: {}]  }
   0x1   :  { %s2331_s19 = smov 0  }
   0x2 LB: > { %s33_s20 = sadd.s32 1, %s2261_s18  ;;  %p2029_p0 = scmp.ge.s32.totalorder %s2265_s19, 1  ;;  %s2265_s19 = sphi %s2331_s19, %s21_s19   ;;  %s2261_s18 = sphi %s2329_s18, %s2839_s18   ;;  %s2257_s17 = sphi %s2327_s17, %s2838_s17  }
   0x3   : > { %p35_p1 = scmp.ge.s32.totalorder %s33_s20, 2  ;;  %p437_p2 = scmp.lt.s32.totalorder %s2265_s19, 3 }
   0x5   : > { %s2841_s20 = smov (%p35_p1, %s33_s20), 0  ;;  %p438_p3 = pnand %p2029_p0, %p437_p2 }
   0x6   : > { %p519_p4 = scmp.lt.s32.totalorder (!%p438_p3), %s2257_s17, 1 }
   0x7   : > { %441 = sbr.rel (%p438_p3) target bundleno = 694 (0x2b6), region = 64 }
   0xc   : > { %v581_v0 = vld [vmem:[%s2828_s4] sm:$0x3]  ;;  %vm683_vm0 = vcmask 1041408   ;;  %s2843_s17 = smov (!%p519_p4, %s2257_s17), 1  ;;  %vm658_vm1 = vcmask 31744   ;;  %vm1091_vm2 = vcmask 1043456  }
   0xd   : > { %v685_v1 = vsel %vm683_vm0, %v581_v0, 0  ;;  %s2349_s23 = sshll.u32 %s2843_s17, 6  ;;  %v2090_v19 = vld [vmem:[%s2829_s5 + $0x4] sm:$0xf]  ;;  %v2109_v22 = vld [vmem:[%s2829_s5 + $0x10] sm:$0xf] }
   0xe   : > { %694 = vmatpush.bf16.msra.mxu0 %v685_v1  ;;  %926 = vmatpush.bf16.msra.mxu3 %v685_v1  ;;  %s2355_s26 = scalar_lea.vmem %s2824_s0, %s2349_s23  ;;  %s539_s29 = scalar_lea.vmem %s2825_s1, %s2349_s23  ;;  %v1093_v21 = vsel %vm1091_vm2, %v2090_v19, 0  ;;  %v1451_v23 = vsel %vm1091_vm2, %v2109_v22, 0  ;;  %v2114_v24 = vld [vmem:[%s2829_s5 + $0x14] sm:$0xf]  ;;  %v2420_v26 = vld [vmem:[%s2832_s8] ss:$0 sm:$0xff] }
   0xf   : > { %839 = vmatpush.bf16.msra.mxu1 %v685_v1  ;;  %v2158_v2 = vld [vmem:[%s2355_s26] sm:$0xff]   ;;  %s2366_s13 = scalar_lea.vmem %s2826_s2, %s2349_s23  ;;  %s565_s16 = scalar_lea.vmem %s2827_s3, %s2349_s23  ;;  %v2189_v5 = vld [vmem:[%s2355_s26 + $0x8] sm:$0xff]   ;;  %v2190_v8 = vld [vmem:[%s2355_s26 + $0x10] sm:$0xff]   ;;  %1102 = vmatpush.bf16.msra.mxu2 %v1093_v21  ;;  %v1509_v25 = vsel %vm1091_vm2, %v2114_v24, 0  ;;  %vm1078_vm3 = vcmask 64512   ;;  %vm1044_vm4 = vcmask 1040384  }
  0x10   : > { %v915_v3 = vld [vmem:[%s539_s29] sm:$0xf]  ;;  %v2150_v7 = vld [vmem:[%s2366_s13 + $0x8] sm:$0xff]  ;;  %v2151_v9 = vld [vmem:[%s2366_s13 + $0x10] sm:$0xff]  ;;  %vm1045_vm5 = vsmask.f32 256  ;;  %s2797_s21 = scalar_lea.vmem %s2835_s11, %s2349_s23 }
  0x11   : > { %2040 = vmatmul.msk.bf16.vlgmr.msra.gmra.mxu0 %vm658_vm1, %v2158_v2  ;;  %2088 = vmatmul.msk.bf16.vlgmr.msra.gmra.mxu3 %vm658_vm1, %v915_v3  ;;  %v2149_v4 = vld [vmem:[%s2366_s13] sm:$0xff]  ;;  %v2191_v10 = vld [vmem:[%s2355_s26 + $0x18] sm:$0xff]   ;;  %v2193_v14 = vld [vmem:[%s2355_s26 + $0x28] sm:$0xff]  }
  0x12   : > { %947 = vmatpush.bf16.msrb.mxu3 %v685_v1  ;;  %2080 = vmatmul.msk.bf16.vlgmr.msra.gmra.mxu1 %vm658_vm1, %v2149_v4  ;;  %v936_v6 = vld [vmem:[%s565_s16] sm:$0xf]  ;;  %v2152_v11 = vld [vmem:[%s2366_s13 + $0x18] sm:$0xff]  ;;  %v2154_v15 = vld [vmem:[%s2366_s13 + $0x28] sm:$0xff] }
  0x13   : > { %v2192_v12 = vld [vmem:[%s2355_s26 + $0x20] sm:$0xff]   ;;  %v2194_v16 = vld [vmem:[%s2355_s26 + $0x30] sm:$0xff]   ;;  %v2195_v18 = vld [vmem:[%s2355_s26 + $0x38] sm:$0xff]   ;;  %1460 = vmatpush.bf16.msrb.mxu0 %v1451_v23  ;;  %1518 = vmatpush.bf16.msrb.mxu1 %v1509_v25 }
  0x14   : > { %v2153_v13 = vld [vmem:[%s2366_s13 + $0x20] sm:$0xff]  ;;  %v2155_v17 = vld [vmem:[%s2366_s13 + $0x30] sm:$0xff]  ;;  %v2156_v20 = vld [vmem:[%s2366_s13 + $0x38] sm:$0xff] }
  0x15   : > { %v1055_v42 = vld [vmem:[%s2829_s5] sm:$0xf]  ;;  %vm2445_vm6 = vmand %vm1044_vm4, %vm1045_vm5 }
  0x16   : > { %v1157_v44 = vsel %vm1091_vm2, %v1055_v42, 0 }
  0x17   : > { %1166 = vmatpush.bf16.msra.mxu3 %v1157_v44 }
  0x21   : > { %2041 = vmatmul.msk.bf16.gmra.mxu0 %vm658_vm1, %v2189_v5  ;;  %2089 = vmatmul.msk.bf16.vlgmr.msrb.gmra.mxu3 %vm658_vm1, %v936_v6 }
  0x22   : > { %2081 = vmatmul.msk.bf16.gmra.mxu1 %vm658_vm1, %v2150_v7 }
  0x31   : > { %2042 = vmatmul.msk.bf16.gmra.mxu0 %vm658_vm1, %v2190_v8 }
  0x32   : > { %2082 = vmatmul.msk.bf16.gmra.mxu1 %vm658_vm1, %v2151_v9 }
  0x41   : > { %2043 = vmatmul.msk.bf16.gmra.mxu0 %vm658_vm1, %v2191_v10 }
  0x42   : > { %2083 = vmatmul.msk.bf16.gmra.mxu1 %vm658_vm1, %v2152_v11 }
  0x51   : > { %2044 = vmatmul.msk.bf16.gmra.mxu0 %vm658_vm1, %v2192_v12 }
  0x52   : > { %2084 = vmatmul.msk.bf16.gmra.mxu1 %vm658_vm1, %v2153_v13 }
  0x61   : > { %2045 = vmatmul.msk.bf16.gmra.mxu0 %vm658_vm1, %v2193_v14 }
  0x62   : > { %2085 = vmatmul.msk.bf16.gmra.mxu1 %vm658_vm1, %v2154_v15 }
  0x71   : > { %2046 = vmatmul.msk.bf16.gmra.mxu0 %vm658_vm1, %v2194_v16 }
  0x72   : > { %2086 = vmatmul.msk.bf16.gmra.mxu1 %vm658_vm1, %v2155_v17 }
  0x81   : > { %2047 = vmatmul.msk.bf16.gmra.mxu0 %vm658_vm1, %v2195_v18 }
  0x82   : > { %2087 = vmatmul.msk.bf16.gmra.mxu1 %vm658_vm1, %v2156_v20 }
  0x8e   : > { %v696_v27 = vpop.f32.mrf.mxu0 }
  0x8f   : > { %v841_v28 = vpop.f32.mrf.mxu1  ;;  %v697_v38 = vadd.f32 %v2420_v26, %v696_v27 }
  0x90   : > { %v842_v29 = vadd.f32 %v2420_v26, %v841_v28 }
  0x91   : > { %v736_v49 = vmax.f32 %v697_v38, 0.0 }
  0x92   : > { %v881_v30 = vmax.f32 %v842_v29, 0.0 }
  0x93   : > { %v752_v59 = vpack.c.bf16 %v736_v49, %v736_v49 }
  0x94   : > { %v928_v31 = vpop.f32.mrf.mxu3  ;;  %v897_v33 = vpack.c.bf16 %v881_v30, %v881_v30 }
  0x95   : > { %v929_v32 = vadd.f32 %v2420_v26, %v928_v31  ;;  %v1426_v3 = vunpack.c.l.b16 %v752_v59 }
  0x96   : > { %v698_v34 = vpop.f32.mrf.mxu0  ;;  %v1254_v43 = vunpack.c.l.b16 %v897_v33 }
  0x97   : > { %v932_v35 = vmax.f32 %v929_v32, 0.0  ;;  %v699_v36 = vadd.f32 %v2420_v26, %v698_v34  ;;  %v843_v37 = vpop.f32.mrf.mxu1 }
  0x98   : > { %v844_v41 = vadd.f32 %v2420_v26, %v843_v37  ;;  %v1262_v52 = vpack.c.b16 %v1254_v43, %v1254_v43 }
  0x99   : > { %v934_v39 = vmul.f32 0.0, %v932_v35  ;;  %v737_v40 = vmax.f32 %v699_v36, 0.0 }
  0x9a   : > { %v882_v47 = vmax.f32 %v844_v41, 0.0  ;;  %v1271_v62 = vshrl.u32 %v1262_v52, 16  ;;  %v1274_v13 = vshll.u32 %v1262_v52, 16 }
  0x9b   : > { %v935_v45 = vpack.c.bf16 %v934_v39, %v934_v39  ;;  %v2431_v46 = vpack.c.bf16 %v737_v40, %v737_v40 }
  0x9c   : > { %v930_v48 = vpop.f32.mrf.mxu3  ;;  %v898_v53 = vpack.c.bf16 %v882_v47, %v882_v47  ;;  %v1273_v7 = vrot.slane %v1271_v62, 7 }
  0x9d   : > { %v1066_v50 = vunpack.c.l.b16 %v935_v45  ;;  %v1067_v51 = vunpack.c.l.b16 %v2431_v46 }
  0x9e   : > { %v701_v54 = vpop.f32.mrf.mxu0  ;;  %v2435_v57 = vunpack.c.l.b16 %v898_v53  ;;  %v1276_v20 = vor.u32 %v1274_v13, %v1273_v7 }
  0x9f   : > { %v702_v55 = vadd.f32 %v2420_v26, %v701_v54  ;;  %v1074_v56 = vpack.c.b16 %v1067_v51, %v1066_v50  ;;  %v846_v58 = vpop.f32.mrf.mxu1 }
  0xa0   : > { %v847_v61 = vadd.f32 %v2420_v26, %v846_v58  ;;  %v973_v1 = vpack.c.b16 %v2435_v57, %v2435_v57  ;;  %v1334_v34 = vsel %vm2445_vm6, 0, %v1276_v20 }
  0xa1   : > { %v738_v60 = vmax.f32 %v702_v55, 0.0  ;;  %2091 = vmatmul.msk.bf16.vlgmr.msra.gmra.mxu2 %vm1078_vm3, %v1074_v56  ;;  %v2465_v49 = vunpack.c.l.b16 %v1334_v34 }
  0xa2   : > { %v883_v0 = vmax.f32 %v847_v61, 0.0  ;;  %v988_v14 = vshrl.u32 %v973_v1, 16  ;;  %v991_v35 = vshll.u32 %v973_v1, 16 }
  0xa3   : > { %v754_v63 = vpack.c.bf16 %v738_v60, %v738_v60 }
  0xa4   : > { %v949_v2 = vpop.f32.mrf.mxu3  ;;  %v899_v5 = vpack.c.bf16 %v883_v0, %v883_v0  ;;  %v990_v27 = vrot.slane %v988_v14, 7 }
  0xa5   : > { %v1427_v4 = vunpack.c.l.b16 %v754_v63  ;;  %v950_v6 = vadd.f32 %v2420_v26, %v949_v2 }
  0xa6   : > { %v703_v8 = vpop.f32.mrf.mxu0  ;;  %v1255_v10 = vunpack.c.l.b16 %v899_v5  ;;  %v993_v42 = vor.u32 %v991_v35, %v990_v27 }
  0xa7   : > { %v1434_v9 = vpack.c.b16 %v1427_v4, %v1426_v3  ;;  %v953_v11 = vmax.f32 %v950_v6, 0.0  ;;  %v704_v12 = vadd.f32 %v2420_v26, %v703_v8  ;;  %v848_v15 = vpop.f32.mrf.mxu1 }
  0xa8   : > { %v1263_v16 = vpack.c.b16 %v1255_v10, %v1255_v10  ;;  %v1492_v17 = vpack.c.b16 %v1255_v10, %v1254_v43  ;;  %v849_v21 = vadd.f32 %v2420_v26, %v848_v15  ;;  %v1048_v54 = vsel %vm2445_vm6, 0, %v993_v42 }
  0xa9   : > { %v954_v18 = vmul.f32 0.0, %v953_v11  ;;  %v739_v19 = vmax.f32 %v704_v12, 0.0  ;;  %2110 = vmatmul.msk.bf16.vlgmr.msrb.gmra.mxu0 %vm1078_vm3, %v1434_v9  ;;  %v2480_v1 = vunpack.c.l.b16 %v1048_v54 }
  0xaa   : > { %v1278_v23 = vshrl.u32 %v1263_v16, 16  ;;  %2115 = vmatmul.msk.bf16.vlgmr.msrb.gmra.mxu1 %vm1078_vm3, %v1492_v17  ;;  %v884_v28 = vmax.f32 %v849_v21, 0.0  ;;  %v1281_v31 = vshll.u32 %v1263_v16, 16 }
  0xab   : > { %v955_v24 = vpack.c.bf16 %v954_v18, %v954_v18  ;;  %v755_v25 = vpack.c.bf16 %v739_v19, %v739_v19 }
  0xac   : > { %v951_v29 = vpop.f32.mrf.mxu3  ;;  %v1280_v30 = vrot.slane %v1278_v23, 7  ;;  %v900_v36 = vpack.c.bf16 %v884_v28, %v884_v28 }
  0xad   : > { %v2450_v32 = vunpack.c.l.b16 %v955_v24  ;;  %v1068_v33 = vunpack.c.l.b16 %v755_v25 }
  0xae   : > { %v706_v37 = vpop.f32.mrf.mxu0  ;;  %v1283_v38 = vor.u32 %v1281_v31, %v1280_v30  ;;  %v2460_v43 = vunpack.c.l.b16 %v900_v36 }
  0xaf   : > { %v972_v39 = vpack.c.b16 %v2450_v32, %v2450_v32  ;;  %v1190_v40 = vpack.c.b16 %v2435_v57, %v2450_v32  ;;  %v2458_v41 = vpack.c.b16 %v1068_v33, %v1067_v51  ;;  %v851_v44 = vpop.f32.mrf.mxu1  ;;  %v707_v3 = vadd.f32 %v2420_v26, %v706_v37 }
  0xb0   : > { %v1335_v45 = vsel %vm2445_vm6, 0, %v1283_v38  ;;  %v852_v48 = vadd.f32 %v2420_v26, %v851_v44  ;;  %v974_v52 = vpack.c.b16 %v2460_v43, %v2460_v43  ;;  %v1682_v51 = vpack.c.b16 %v2460_v43, %v2435_v57 }
  0xb1   : > { %v981_v46 = vshrl.u32 %v972_v39, 16  ;;  %v984_v47 = vshll.u32 %v972_v39, 16  ;;  %v2467_v50 = vunpack.c.l.b16 %v1335_v45  ;;  %v740_v13 = vmax.f32 %v707_v3, 0.0  ;;  %v2099_v45 = vld [vmem:[%s2829_s5 + $0x8] sm:$0xf] }
  0xb2   : > { %v995_v55 = vshrl.u32 %v974_v52, 16  ;;  %v885_v56 = vmax.f32 %v852_v48, 0.0  ;;  %v998_v60 = vshll.u32 %v974_v52, 16  ;;  %v1207_v48 = vsel %vm1091_vm2, %v2099_v45, 0 }
  0xb3   : > { %v983_v53 = vrot.slane %v981_v46, 7  ;;  %v1360_v58 = vpack.c.b16 %v2467_v50, %v2465_v49  ;;  %v756_v24 = vpack.c.bf16 %v740_v13, %v740_v13  ;;  %v2104_v46 = vld [vmem:[%s2829_s5 + $0xc] sm:$0xf]  ;;  %1216 = vmatpush.bf16.msrb.mxu2 %v1207_v48 }
  0xb4   : > { %v997_v62 = vrot.slane %v995_v55, 7  ;;  %v901_v4 = vpack.c.bf16 %v885_v56, %v885_v56  ;;  %v1377_v52 = vsel %vm1091_vm2, %v2104_v46, 0 }
  0xb5   : > { %v986_v59 = vor.u32 %v984_v47, %v983_v53  ;;  %v1428_v37 = vunpack.c.l.b16 %v756_v24  ;;  %1386 = vmatpush.bf16.msrb.mxu3 %v1377_v52 }
  0xb6   : > { %v708_v61 = vpop.f32.mrf.mxu0  ;;  %v1000_v6 = vor.u32 %v998_v60, %v997_v62  ;;  %v1256_v14 = vunpack.c.l.b16 %v901_v4 }
  0xb7   : > { %v1047_v63 = vsel %vm2445_vm6, 0, %v986_v59  ;;  %v709_v0 = vadd.f32 %v2420_v26, %v708_v61  ;;  %v853_v5 = vpop.f32.mrf.mxu1 }
  0xb8   : > { %v1132_v2 = vunpack.c.l.b16 %v1047_v63  ;;  %v854_v8 = vadd.f32 %v2420_v26, %v853_v5  ;;  %v1049_v10 = vsel %vm2445_vm6, 0, %v1000_v6  ;;  %v1264_v25 = vpack.c.b16 %v1256_v14, %v1256_v14 }
  0xb9   : > { %v741_v7 = vmax.f32 %v709_v0, 0.0  ;;  %v2490_v15 = vunpack.c.l.b16 %v1049_v10 }
  0xba   : > { %v1140_v9 = vpack.c.b16 %v2480_v1, %v1132_v2  ;;  %v886_v12 = vmax.f32 %v854_v8, 0.0  ;;  %v1285_v38 = vshrl.u32 %v1264_v25, 16  ;;  %v1288_v2 = vshll.u32 %v1264_v25, 16 }
  0xbb   : > { %v2487_v11 = vpack.c.bf16 %v741_v7, %v741_v7  ;;  %v1564_v19 = vpack.c.b16 %v2490_v15, %v2480_v1 }
  0xbc   : > { %2095 = vmatmul.msk.bf16.vlgmr.msra.gmra.mxu3 %vm1078_vm3, %v1140_v9  ;;  %v902_v17 = vpack.c.bf16 %v886_v12, %v886_v12  ;;  %v1287_v59 = vrot.slane %v1285_v38, 7 }
  0xbd   : > { %v1069_v16 = vunpack.c.l.b16 %v2487_v11 }
  0xbe   : > { %v711_v18 = vpop.f32.mrf.mxu0  ;;  %v2495_v20 = vunpack.c.l.b16 %v902_v17  ;;  %v1290_v7 = vor.u32 %v1288_v2, %v1287_v59 }
  0xbf   : > { %v712_v21 = vadd.f32 %v2420_v26, %v711_v18  ;;  %v1075_v23 = vpack.c.b16 %v1069_v16, %v1068_v33  ;;  %v856_v27 = vpop.f32.mrf.mxu1 }
  0xc0   : > { %v975_v28 = vpack.c.b16 %v2495_v20, %v2495_v20  ;;  %v857_v30 = vadd.f32 %v2420_v26, %v856_v27  ;;  %v1191_v31 = vpack.c.b16 %v2495_v20, %v2460_v43 }
  0xc1   : > { %v742_v29 = vmax.f32 %v712_v21, 0.0  ;;  %2092 = vmatmul.msk.bf16.gmra.mxu2 %vm1078_vm3, %v1075_v23 }
  0xc2   : > { %v1002_v34 = vshrl.u32 %v975_v28, 16  ;;  %v887_v36 = vmax.f32 %v857_v30, 0.0  ;;  %v1005_v33 = vshll.u32 %v975_v28, 16  ;;  %v1336_v28 = vsel %vm2445_vm6, 0, %v1290_v7 }
  0xc3   : > { %v758_v35 = vpack.c.bf16 %v742_v29, %v742_v29 }
  0xc4   : > { %v903_v42 = vpack.c.bf16 %v887_v36, %v887_v36  ;;  %v1004_v44 = vrot.slane %v1002_v34, 7  ;;  %v2536_v34 = vunpack.c.l.b16 %v1336_v28 }
  0xc5   : > { %v1429_v39 = vunpack.c.l.b16 %v758_v35 }
  0xc6   : > { %v713_v47 = vpop.f32.mrf.mxu0  ;;  %v1257_v53 = vunpack.c.l.b16 %v903_v42  ;;  %v1007_v56 = vor.u32 %v1005_v33, %v1004_v44 }
  0xc7   : > { %v714_v54 = vadd.f32 %v2420_v26, %v713_v47  ;;  %v1435_v55 = vpack.c.b16 %v1429_v39, %v1428_v37  ;;  %v858_v60 = vpop.f32.mrf.mxu1 }
  0xc8   : > { %v1265_v61 = vpack.c.b16 %v1257_v53, %v1257_v53  ;;  %v859_v63 = vadd.f32 %v2420_v26, %v858_v60  ;;  %v1493_v0 = vpack.c.b16 %v1257_v53, %v1256_v14  ;;  %v1050_v3 = vsel %vm2445_vm6, 0, %v1007_v56 }
  0xc9   : > { %v743_v62 = vmax.f32 %v714_v54, 0.0  ;;  %2111 = vmatmul.msk.bf16.gmra.mxu0 %vm1078_vm3, %v1435_v55  ;;  %v2518_v8 = vunpack.c.l.b16 %v1050_v3 }
  0xca   : > { %v1292_v4 = vshrl.u32 %v1265_v61, 16  ;;  %v888_v6 = vmax.f32 %v859_v63, 0.0  ;;  %2116 = vmatmul.msk.bf16.gmra.mxu1 %vm1078_vm3, %v1493_v0  ;;  %v1295_v10 = vshll.u32 %v1265_v61, 16 }
  0xcb   : > { %v759_v5 = vpack.c.bf16 %v743_v62, %v743_v62  ;;  %v1141_v14 = vpack.c.b16 %v2518_v8, %v2490_v15 }
  0xcc   : > { %v1294_v9 = vrot.slane %v1292_v4, 7  ;;  %v904_v12 = vpack.c.bf16 %v888_v6, %v888_v6 }
  0xcd   : > { %v1070_v11 = vunpack.c.l.b16 %v759_v5  ;;  %2096 = vmatmul.msk.bf16.gmra.mxu3 %vm1078_vm3, %v1141_v14 }
  0xce   : > { %v716_v13 = vpop.f32.mrf.mxu0  ;;  %v1297_v17 = vor.u32 %v1295_v10, %v1294_v9  ;;  %v2522_v18 = vunpack.c.l.b16 %v904_v12 }
  0xcf   : > { %v2524_v21 = vpack.c.b16 %v1070_v11, %v1069_v16  ;;  %v861_v23 = vpop.f32.mrf.mxu1  ;;  %v717_v44 = vadd.f32 %v2420_v26, %v716_v13 }
  0xd0   : > { %v976_v24 = vpack.c.b16 %v2522_v18, %v2522_v18  ;;  %v862_v25 = vadd.f32 %v2420_v26, %v861_v23  ;;  %v1683_v27 = vpack.c.b16 %v2522_v18, %v2495_v20  ;;  %v1337_v29 = vsel %vm2445_vm6, 0, %v1297_v17 }
  0xd1   : > { %v2538_v35 = vunpack.c.l.b16 %v1337_v29  ;;  %v744_v56 = vmax.f32 %v717_v44, 0.0 }
  0xd2   : > { %v1009_v30 = vshrl.u32 %v976_v24, 16  ;;  %v889_v16 = vmax.f32 %v862_v25, 0.0  ;;  %v1012_v36 = vshll.u32 %v976_v24, 16 }
  0xd3   : > { %v1361_v33 = vpack.c.b16 %v2538_v35, %v2536_v34  ;;  %v760_v4 = vpack.c.bf16 %v744_v56, %v744_v56 }
  0xd4   : > { %v1011_v37 = vrot.slane %v1009_v30, 7  ;;  %v905_v45 = vpack.c.bf16 %v889_v16, %v889_v16 }
  0xd5   : > { %v1430_v23 = vunpack.c.l.b16 %v760_v4 }
  0xd6   : > { %v718_v38 = vpop.f32.mrf.mxu0  ;;  %v1014_v42 = vor.u32 %v1012_v36, %v1011_v37  ;;  %v1258_v59 = vunpack.c.l.b16 %v905_v45 }
  0xd7   : > { %v719_v39 = vadd.f32 %v2420_v26, %v718_v38  ;;  %v863_v46 = vpop.f32.mrf.mxu1 }
  0xd8   : > { %v864_v48 = vadd.f32 %v2420_v26, %v863_v46  ;;  %v1051_v52 = vsel %vm2445_vm6, 0, %v1014_v42  ;;  %v1266_v5 = vpack.c.b16 %v1258_v59, %v1258_v59 }
  0xd9   : > { %v745_v47 = vmax.f32 %v719_v39, 0.0  ;;  %v2547_v53 = vunpack.c.l.b16 %v1051_v52 }
  0xda   : > { %v890_v55 = vmax.f32 %v864_v48, 0.0  ;;  %v1299_v24 = vshrl.u32 %v1266_v5, 16  ;;  %v1302_v48 = vshll.u32 %v1266_v5, 16 }
  0xdb   : > { %v761_v54 = vpack.c.bf16 %v745_v47, %v745_v47  ;;  %v1565_v60 = vpack.c.b16 %v2547_v53, %v2518_v8 }
  0xdc   : > { %v906_v62 = vpack.c.bf16 %v890_v55, %v890_v55  ;;  %v1301_v39 = vrot.slane %v1299_v24, 7 }
  0xdd   : > { %v1071_v61 = vunpack.c.l.b16 %v761_v54 }
  0xde   : > { %v721_v63 = vpop.f32.mrf.mxu0  ;;  %v2551_v0 = vunpack.c.l.b16 %v906_v62  ;;  %v1304_v62 = vor.u32 %v1302_v48, %v1301_v39 }
  0xdf   : > { %v722_v2 = vadd.f32 %v2420_v26, %v721_v63  ;;  %v1076_v3 = vpack.c.b16 %v1071_v61, %v1070_v11  ;;  %v866_v6 = vpop.f32.mrf.mxu1 }
  0xe0   : > { %v977_v7 = vpack.c.b16 %v2551_v0, %v2551_v0  ;;  %v867_v10 = vadd.f32 %v2420_v26, %v866_v6  ;;  %v1192_v12 = vpack.c.b16 %v2551_v0, %v2522_v18 }
  0xe1   : > { %v746_v9 = vmax.f32 %v722_v2, 0.0  ;;  %2093 = vmatmul.msk.bf16.gmra.mxu2 %vm1078_vm3, %v1076_v3 }
  0xe2   : > { %v1016_v13 = vshrl.u32 %v977_v7, 16  ;;  %v891_v17 = vmax.f32 %v867_v10, 0.0  ;;  %v1019_v25 = vshll.u32 %v977_v7, 16 }
  0xe3   : > { %v762_v14 = vpack.c.bf16 %v746_v9, %v746_v9 }
  0xe4   : > { %v1018_v11 = vrot.slane %v1016_v13, 7  ;;  %v907_v29 = vpack.c.bf16 %v891_v17, %v891_v17  ;;  %v1338_v17 = vsel %vm2445_vm6, 0, %v1304_v62 }
  0xe5   : > { %v1431_v28 = vunpack.c.l.b16 %v762_v14 }
  0xe6   : > { %v723_v30 = vpop.f32.mrf.mxu0  ;;  %v1259_v16 = vunpack.c.l.b16 %v907_v29  ;;  %v1021_v38 = vor.u32 %v1019_v25, %v1018_v11  ;;  %v2581_v11 = vunpack.c.l.b16 %v1338_v17 }
  0xe7   : > { %v724_v36 = vadd.f32 %v2420_v26, %v723_v30  ;;  %v1436_v37 = vpack.c.b16 %v1431_v28, %v1430_v23  ;;  %v868_v42 = vpop.f32.mrf.mxu1 }
  0xe8   : > { %v1267_v44 = vpack.c.b16 %v1259_v16, %v1259_v16  ;;  %v869_v46 = vadd.f32 %v2420_v26, %v868_v42  ;;  %v1494_v47 = vpack.c.b16 %v1259_v16, %v1258_v59  ;;  %v1052_v52 = vsel %vm2445_vm6, 0, %v1021_v38 }
  0xe9   : > { %v747_v45 = vmax.f32 %v724_v36, 0.0  ;;  %2112 = vmatmul.msk.bf16.gmra.mxu0 %vm1078_vm3, %v1436_v37  ;;  %v2566_v63 = vunpack.c.l.b16 %v1052_v52  ;;  %v2129_v37 = vld [vmem:[%s2829_s5 + $0x20] sm:$0xf] }
  0xea   : > { %v1306_v54 = vshrl.u32 %v1267_v44, 16  ;;  %v892_v56 = vmax.f32 %v869_v46, 0.0  ;;  %2117 = vmatmul.msk.bf16.gmra.mxu1 %vm1078_vm3, %v1494_v47  ;;  %v1309_v3 = vshll.u32 %v1267_v44, 16  ;;  %v1699_v42 = vsel %vm1091_vm2, %v2129_v37, 0  ;;  %v2119_v47 = vld [vmem:[%s2829_s5 + $0x18] sm:$0xf] }
  0xeb   : > { %v763_v55 = vpack.c.bf16 %v747_v45, %v747_v45  ;;  %v1142_v59 = vpack.c.b16 %v2566_v63, %v2547_v53  ;;  %1708 = vmatpush.bf16.msra.mxu0 %v1699_v42  ;;  %v1581_v52 = vsel %vm1091_vm2, %v2119_v47, 0 }
  0xec   : > { %v1308_v2 = vrot.slane %v1306_v54, 7  ;;  %v908_v6 = vpack.c.bf16 %v892_v56, %v892_v56  ;;  %1590 = vmatpush.bf16.msra.mxu2 %v1581_v52 }
  0xed   : > { %v1072_v4 = vunpack.c.l.b16 %v763_v55  ;;  %2097 = vmatmul.msk.bf16.gmra.mxu3 %vm1078_vm3, %v1142_v59 }
  0xee   : > { %v726_v7 = vpop.f32.mrf.mxu0  ;;  %v1311_v5 = vor.u32 %v1309_v3, %v1308_v2  ;;  %v2572_v10 = vunpack.c.l.b16 %v908_v6 }
  0xef   : > { %v2570_v9 = vpack.c.b16 %v1072_v4, %v1071_v61  ;;  %v871_v13 = vpop.f32.mrf.mxu1  ;;  %v727_v38 = vadd.f32 %v2420_v26, %v726_v7 }
  0xf0   : > { %v978_v14 = vpack.c.b16 %v2572_v10, %v2572_v10  ;;  %v1339_v23 = vsel %vm2445_vm6, 0, %v1311_v5  ;;  %v872_v54 = vadd.f32 %v2420_v26, %v871_v13  ;;  %v1684_v32 = vpack.c.b16 %v2572_v10, %v2551_v0 }
  0xf1   : > { %v2583_v25 = vunpack.c.l.b16 %v1339_v23  ;;  %v748_v62 = vmax.f32 %v727_v38, 0.0 }
  0xf2   : > { %v1023_v24 = vshrl.u32 %v978_v14, 16  ;;  %v1026_v28 = vshll.u32 %v978_v14, 16  ;;  %v893_v59 = vmax.f32 %v872_v54, 0.0 }
  0xf3   : > { %v1362_v30 = vpack.c.b16 %v2583_v25, %v2581_v11  ;;  %v764_v17 = vpack.c.bf16 %v748_v62, %v748_v62 }
  0xf4   : > { %v1025_v61 = vrot.slane %v1023_v24, 7  ;;  %v2124_v24 = vld [vmem:[%s2829_s5 + $0x1c] sm:$0xf] }
  0xf6   : > { %v728_v29 = vpop.f32.mrf.mxu0  ;;  %v1028_v36 = vor.u32 %v1026_v28, %v1025_v61 }
  0xf7   : > { %v729_v16 = vadd.f32 %v2420_v26, %v728_v29  ;;  %v873_v39 = vpop.f32.mrf.mxu1 }
  0xf8   : > { %v874_v45 = vadd.f32 %v2420_v26, %v873_v39  ;;  %v1053_v46 = vsel %vm2445_vm6, 0, %v1028_v36  ;;  %v909_v36 = vpack.c.bf16 %v893_v59, %v893_v59  ;;  %v1432_v39 = vunpack.c.l.b16 %v764_v17 }
  0xf9   : > { %v749_v44 = vmax.f32 %v729_v16, 0.0  ;;  %v2599_v48 = vunpack.c.l.b16 %v1053_v46  ;;  %v1641_v16 = vsel %vm1091_vm2, %v2124_v24, 0 }
  0xfa   : > { %v894_v56 = vmax.f32 %v874_v45, 0.0  ;;  %1650 = vmatpush.bf16.msra.mxu3 %v1641_v16  ;;  %v1260_v47 = vunpack.c.l.b16 %v909_v36 }
  0xfb   : > { %v2603_v55 = vpack.c.bf16 %v749_v44, %v749_v44  ;;  %v1566_v2 = vpack.c.b16 %v2599_v48, %v2566_v63 }
  0xfc   : > { %v910_v6 = vpack.c.bf16 %v894_v56, %v894_v56  ;;  %v1268_v49 = vpack.c.b16 %v1260_v47, %v1260_v47 }
  0xfd   : > { %v1073_v3 = vunpack.c.l.b16 %v2603_v55  ;;  %v1763_v55 = vld [vmem:[%s2831_s7] sm:$0x3] }
  0xfe   : > { %v731_v7 = vpop.f32.mrf.mxu0  ;;  %v2608_v5 = vunpack.c.l.b16 %v910_v6 }
  0xff   : > { %v732_v14 = vadd.f32 %v2420_v26, %v731_v7  ;;  %v1077_v13 = vpack.c.b16 %v1073_v3, %v1072_v4  ;;  %v876_v23 = vpop.f32.mrf.mxu1 }
 0x100   : > { %v979_v61 = vpack.c.b16 %v2608_v5, %v2608_v5  ;;  %v877_v29 = vadd.f32 %v2420_v26, %v876_v23  ;;  %v1193_v35 = vpack.c.b16 %v2608_v5, %v2572_v10 }
 0x101   : > { %v750_v28 = vmax.f32 %v732_v14, 0.0  ;;  %2094 = vmatmul.msk.bf16.gmra.mxu2 %vm1078_vm3, %v1077_v13 }
 0x102   : > { %v1030_v37 = vshrl.u32 %v979_v61, 16  ;;  %v895_v38 = vmax.f32 %v877_v29, 0.0  ;;  %v1033_v44 = vshll.u32 %v979_v61, 16 }
 0x103   : > { %v766_v4 = vpack.c.bf16 %v750_v28, %v750_v28 }
 0x104   : > { %v1032_v42 = vrot.slane %v1030_v37, 7  ;;  %v911_v46 = vpack.c.bf16 %v895_v38, %v895_v38 }
 0x105   : > { %v1433_v45 = vunpack.c.l.b16 %v766_v4 }
 0x106   : > { %v1261_v52 = vunpack.c.l.b16 %v911_v46  ;;  %v1035_v56 = vor.u32 %v1033_v44, %v1032_v42 }
 0x107   : > { %v1437_v54 = vpack.c.b16 %v1433_v45, %v1432_v39  ;;  %v878_v57 = vpop.f32.mrf.mxu1  ;;  %v733_v39 = vpop.f32.mrf.mxu0 }
 0x108   : > { %v1495_v62 = vpack.c.b16 %v1261_v52, %v1260_v47  ;;  %v1054_v6 = vsel %vm2445_vm6, 0, %v1035_v56  ;;  %v879_v43 = vadd.f32 %v2420_v26, %v878_v57  ;;  %v734_v45 = vadd.f32 %v2420_v26, %v733_v39 }
 0x109   : > { %2113 = vmatmul.msk.bf16.gmra.mxu0 %vm1078_vm3, %v1437_v54  ;;  %v2625_v7 = vunpack.c.l.b16 %v1054_v6  ;;  %v1762_v6 = vld [vmem:[%s2830_s6] sm:$0xf] }
 0x10a   : > { %2118 = vmatmul.msk.bf16.gmra.mxu1 %vm1078_vm3, %v1495_v62  ;;  %v751_v63 = vmax.f32 %v734_v45, 0.0 }
 0x10b   : > { %v1143_v59 = vpack.c.b16 %v2625_v7, %v2599_v48 }
 0x10d   : > { %2098 = vmatmul.msk.bf16.gmra.mxu3 %vm1078_vm3, %v1143_v59  ;;  %v1825_v59 = vsel %vm1091_vm2, %v1762_v6, 0 }
 0x111   : > { %2100 = vmatmul.msk.bf16.vlgmr.msrb.gmra.mxu2 %vm1078_vm3, %v1190_v40  ;;  %v1269_v40 = vpack.c.b16 %v1261_v52, %v1261_v52 }
 0x112   : > { %1834 = vmatpush.bf16.msrb.mxu2 %v1825_v59 }
 0x113   : > { %v1320_v50 = vshrl.u32 %v1269_v40, 16 }
 0x115   : > { %v1322_v20 = vrot.slane %v1320_v50, 7 }
 0x119   : > { %2130 = vmatmul.msk.bf16.vlgmr.msra.gmra.mxu0 %vm1078_vm3, %v1682_v51  ;;  %v896_v51 = vmax.f32 %v879_v43, 0.0 }
 0x11d   : > { %2105 = vmatmul.msk.bf16.vlgmr.msrb.gmra.mxu3 %vm1078_vm3, %v1360_v58  ;;  %v1313_v58 = vshrl.u32 %v1268_v49, 16 }
 0x11f   : > { %v1315_v0 = vrot.slane %v1313_v58, 7 }
 0x121   : > { %2101 = vmatmul.msk.bf16.gmra.mxu2 %vm1078_vm3, %v1191_v31  ;;  %v1323_v31 = vshll.u32 %v1269_v40, 16  ;;  %v1781_v40 = vsel %vm683_vm0, %v1763_v55, 0 }
 0x122   : > { %1790 = vmatpush.bf16.msra.mxu1 %v1781_v40 }
 0x123   : > { %v1325_v14 = vor.u32 %v1323_v31, %v1322_v20 }
 0x124   : > { %v1104_v34 = vpop.f32.mrf.mxu2 }
 0x125   : > { %v1341_v24 = vsel %vm2445_vm6, 0, %v1325_v14 }
 0x126   : > { %v1359_v11 = vunpack.c.l.b16 %v1341_v24  ;;  %v1462_v52 = vpop.f32.mrf.mxu0 }
 0x129   : > { %2131 = vmatmul.msk.bf16.gmra.mxu0 %vm1078_vm3, %v1683_v27  ;;  %v912_v27 = vpack.c.bf16 %v896_v51, %v896_v51 }
 0x12b   : > { %v1549_v13 = vunpack.c.l.b16 %v912_v27 }
 0x12c   : > { %v2677_v25 = vpop.f32.mrf.mxu2 }
 0x12d   : > { %2106 = vmatmul.msk.bf16.gmra.mxu3 %vm1078_vm3, %v1361_v33  ;;  %v1685_v23 = vpack.c.b16 %v1549_v13, %v2608_v5  ;;  %v1550_v36 = vpack.c.b16 %v1549_v13, %v1549_v13 }
 0x12f   : > { %v1552_v38 = vshrl.u32 %v1550_v36, 16  ;;  %v1555_v15 = vshll.u32 %v1550_v36, 16  ;;  %v2198_v36 = vld [vmem:[%s2355_s26] sm:$0xf]  }
 0x131   : > { %2102 = vmatmul.msk.bf16.gmra.mxu2 %vm1078_vm3, %v1192_v12  ;;  %v1316_v12 = vshll.u32 %v1268_v49, 16  ;;  %v1554_v1 = vrot.slane %v1552_v38, 7  ;;  %v2212_v38 = vld [vmem:[%s2355_s26 + $0x4] sm:$0xf0]  }
 0x133   : > { %v1318_v17 = vor.u32 %v1316_v12, %v1315_v0  ;;  %v1557_v8 = vor.u32 %v1555_v15, %v1554_v1  ;;  %v2199_v1 = vor.u32 %v2212_v38, %v2198_v36 }
 0x135   : > { %v1340_v10 = vsel %vm2445_vm6, 0, %v1318_v17  ;;  %2134 = vmatmul.msk.bf16.vlgmr.msra.gmra.mxu1 %vm658_vm1, %v2199_v1 }
 0x139   : > { %2132 = vmatmul.msk.bf16.gmra.mxu0 %vm1078_vm3, %v1684_v32 }
 0x13d   : > { %2107 = vmatmul.msk.bf16.gmra.mxu3 %vm1078_vm3, %v1362_v30  ;;  %v1358_v30 = vunpack.c.l.b16 %v1340_v10 }
 0x13f   : > { %v1168_v18 = vpop.f32.mrf.mxu3  ;;  %v1363_v28 = vpack.c.b16 %v1359_v11, %v1358_v30 }
 0x140   : > { %v1169_v33 = vadd.f32 %v1168_v18, %v1104_v34 }
 0x141   : > { %2103 = vmatmul.msk.bf16.gmra.mxu2 %vm1078_vm3, %v1193_v35 }
 0x144   : > { %v1109_v5 = vpop.f32.mrf.mxu2 }
 0x147   : > { %v2672_v61 = vpop.f32.mrf.mxu3 }
 0x149   : > { %2133 = vmatmul.msk.bf16.gmra.mxu0 %vm1078_vm3, %v1685_v23 }
 0x14c   : > { %v2690_v37 = vpop.f32.mrf.mxu2 }
 0x14d   : > { %2108 = vmatmul.msk.bf16.gmra.mxu3 %vm1078_vm3, %v1363_v28 }
 0x150   : > { %v1173_v29 = vpop.f32.mrf.mxu3 }
 0x151   : > { %2120 = vmatmul.msk.bf16.vlgmr.msra.gmra.mxu2 %vm1078_vm3, %v1564_v19  ;;  %v1174_v16 = vadd.f32 %v1173_v29, %v1109_v5 }
 0x158   : > { %v2692_v4 = vpop.f32.mrf.mxu3 }
 0x15d   : > { %2125 = vmatmul.msk.bf16.vlgmr.msra.gmra.mxu3 %vm1078_vm3, %v2458_v41 }
 0x161   : > { %2121 = vmatmul.msk.bf16.gmra.mxu2 %vm1078_vm3, %v1565_v60  ;;  %v1559_v60 = vsel %vm2445_vm6, 0, %v1557_v8 }
 0x162   : > { %v1563_v42 = vunpack.c.l.b16 %v1559_v60 }
 0x164   : > { %v1114_v41 = vpop.f32.mrf.mxu2 }
 0x16c   : > { %v2702_v44 = vpop.f32.mrf.mxu2 }
 0x16d   : > { %2126 = vmatmul.msk.bf16.gmra.mxu3 %vm1078_vm3, %v2524_v21  ;;  %v1567_v21 = vpack.c.b16 %v1563_v42, %v2625_v7  ;;  %v1464_v7 = vpop.f32.mrf.mxu0  ;;  %v1171_v42 = vadd.f32 %v2672_v61, %v2677_v25 }
 0x170   : > { %v1178_v19 = vpop.f32.mrf.mxu3 }
 0x171   : > { %2122 = vmatmul.msk.bf16.gmra.mxu2 %vm1078_vm3, %v1566_v2  ;;  %v1179_v53 = vadd.f32 %v1178_v19, %v1114_v41  ;;  %v767_v2 = vpack.c.bf16 %v751_v63, %v751_v63 }
 0x173   : > { %v1623_v46 = vunpack.c.l.b16 %v767_v2 }
 0x175   : > { %v1627_v54 = vpack.c.b16 %v1623_v46, %v1073_v3  ;;  %v1467_v3 = vpop.f32.mrf.mxu0  ;;  %v2202_v46 = vld [vmem:[%s2355_s26 + $0x10] sm:$0xf]  }
 0x178   : > { %v2709_v47 = vpop.f32.mrf.mxu3 }
 0x17d   : > { %2127 = vmatmul.msk.bf16.gmra.mxu3 %vm1078_vm3, %v2570_v9  ;;  %v2726_v20 = vpop.f32.mrf.mxu0 }
 0x181   : > { %2123 = vmatmul.msk.bf16.gmra.mxu2 %vm1078_vm3, %v1567_v21 }
 0x184   : > { %v1119_v48 = vpop.f32.mrf.mxu2 }
 0x185   : > { %v1472_v34 = vpop.f32.mrf.mxu0 }
 0x18c   : > { %v2711_v22 = vpop.f32.mrf.mxu2 }
 0x18d   : > { %2128 = vmatmul.msk.bf16.gmra.mxu3 %vm1078_vm3, %v1627_v54  ;;  %v2728_v14 = vpop.f32.mrf.mxu0 }
 0x190   : > { %v1183_v26 = vpop.f32.mrf.mxu3 }
 0x191   : > { %v1184_v56 = vadd.f32 %v1183_v26, %v1119_v48 }
 0x194   : > { %v1218_v62 = vpop.f32.mrf.mxu2 }
 0x195   : > { %v1238_v9 = vadd.f32 %v1218_v62, %v1169_v33  ;;  %v1477_v23 = vpop.f32.mrf.mxu0 }
 0x198   : > { %v2720_v57 = vpop.f32.mrf.mxu3 }
 0x19c   : > { %v1220_v32 = vpop.f32.mrf.mxu2 }
 0x19d   : > { %v1239_v21 = vadd.f32 %v1220_v32, %v1171_v42 }
 0x1a0   : > { %v1388_v43 = vpop.f32.mrf.mxu3 }
 0x1a1   : > { %v1408_v49 = vadd.f32 %v1388_v43, %v1238_v9 }
 0x1a3   : > { %v1482_v58 = vadd.f32 %v1462_v52, %v1408_v49  ;;  %v2213_v52 = vld [vmem:[%s2355_s26 + $0x14] sm:$0xf0]  }
 0x1a4   : > { %v1223_v50 = vpop.f32.mrf.mxu2  ;;  %v2203_v26 = vor.u32 %v2213_v52, %v2202_v46  ;;  %v2215_v46 = vld [vmem:[%s2355_s26 + $0x34] sm:$0xf0]  }
 0x1a5   : > { %v1240_v51 = vadd.f32 %v1223_v50, %v1174_v16  ;;  %v2738_v16 = vpop.f32.mrf.mxu0 }
 0x1a6   : > { %2135 = vmatmul.msk.bf16.gmra.mxu1 %vm658_vm1, %v2203_v26 }
 0x1a8   : > { %v1390_v31 = vpop.f32.mrf.mxu3 }
 0x1a9   : > { %v1409_v63 = vadd.f32 %v1390_v31, %v1239_v21 }
 0x1ab   : > { %v1483_v62 = vadd.f32 %v1464_v7, %v1409_v63  ;;  %v1176_v7 = vadd.f32 %v2692_v4, %v2690_v37 }
 0x1ac   : > { %v1225_v27 = vpop.f32.mrf.mxu2 }
 0x1ad   : > { %v1710_v60 = vpop.f32.mrf.mxu0  ;;  %v1241_v50 = vadd.f32 %v1225_v27, %v1176_v7 }
 0x1b0   : > { %v1393_v18 = vpop.f32.mrf.mxu3 }
 0x1b1   : > { %v1410_v35 = vadd.f32 %v1393_v18, %v1240_v51 }
 0x1b3   : > { %v1484_v12 = vadd.f32 %v1467_v3, %v1410_v35  ;;  %v2755_v3 = vld [vmem:[%s2833_s9] ss:$0 sm:$0xff] }
 0x1b4   : > { %v1228_v33 = vpop.f32.mrf.mxu2  ;;  %v2206_v35 = vld [vmem:[%s2355_s26 + $0x20] sm:$0xf]  }
 0x1b5   : > { %v1242_v0 = vadd.f32 %v1228_v33, %v1179_v53  ;;  %v1520_v53 = vpop.f32.mrf.mxu1  ;;  %v1712_v2 = vpop.f32.mrf.mxu0  ;;  %v2214_v33 = vld [vmem:[%s2355_s26 + $0x24] sm:$0xf0]  }
 0x1b6   : > { %v1540_v54 = vadd.f32 %v1520_v53, %v1482_v58  ;;  %v1181_v53 = vadd.f32 %v2709_v47, %v2702_v44 }
 0x1b8   : > { %v1395_v13 = vpop.f32.mrf.mxu3 }
 0x1bc   : > { %v2730_v17 = vpop.f32.mrf.mxu2 }
 0x1bd   : > { %v1522_v48 = vpop.f32.mrf.mxu1  ;;  %v1715_v40 = vpop.f32.mrf.mxu0 }
 0x1be   : > { %v1541_v55 = vadd.f32 %v1522_v48, %v1483_v62 }
 0x1c0   : > { %v1398_v24 = vpop.f32.mrf.mxu3 }
 0x1c1   : > { %v1412_v10 = vadd.f32 %v1398_v24, %v1242_v0 }
 0x1c3   : > { %v2732_v28 = vadd.f32 %v1472_v34, %v1412_v10  ;;  %v1411_v34 = vadd.f32 %v1395_v13, %v1241_v50  ;;  %v2207_v10 = vor.u32 %v2214_v33, %v2206_v35 }
 0x1c4   : > { %v1233_v11 = vpop.f32.mrf.mxu2 }
 0x1c5   : > { %v1244_v30 = vadd.f32 %v1233_v11, %v1184_v56  ;;  %v1525_v61 = vpop.f32.mrf.mxu1  ;;  %v1485_v36 = vadd.f32 %v2726_v20, %v1411_v34  ;;  %2136 = vmatmul.msk.bf16.gmra.mxu1 %vm658_vm1, %v2207_v10  ;;  %v1717_v27 = vpop.f32.mrf.mxu0 }
 0x1c8   : > { %v2734_v5 = vpop.f32.mrf.mxu3 }
 0x1cc   : > { %v2736_v29 = vpop.f32.mrf.mxu2 }
 0x1cd   : > { %v1527_v11 = vpop.f32.mrf.mxu1  ;;  %v1720_v21 = vpop.f32.mrf.mxu0 }
 0x1ce   : > { %v1543_v13 = vadd.f32 %v1527_v11, %v1485_v36 }
 0x1d0   : > { %v1403_v15 = vpop.f32.mrf.mxu3 }
 0x1d1   : > { %v1414_v41 = vadd.f32 %v1403_v15, %v1244_v30 }
 0x1d3   : > { %v2743_v8 = vadd.f32 %v1477_v23, %v1414_v41  ;;  %v1542_v23 = vadd.f32 %v1525_v61, %v1484_v12 }
 0x1d4   : > { %v1592_v19 = vpop.f32.mrf.mxu2 }
 0x1d5   : > { %v1612_v9 = vadd.f32 %v1592_v19, %v1540_v54  ;;  %v1530_v41 = vpop.f32.mrf.mxu1 }
 0x1d6   : > { %v1544_v54 = vadd.f32 %v1530_v41, %v2732_v28  ;;  %v1186_v28 = vadd.f32 %v2720_v57, %v2711_v22 }
 0x1d8   : > { %v2745_v39 = vpop.f32.mrf.mxu3 }
 0x1dc   : > { %v1594_v45 = vpop.f32.mrf.mxu2 }
 0x1dd   : > { %v1613_v25 = vadd.f32 %v1594_v45, %v1541_v55  ;;  %v1722_v55 = vpop.f32.mrf.mxu0 }
 0x1e0   : > { %v1652_v56 = vpop.f32.mrf.mxu3 }
 0x1e1   : > { %v1672_v59 = vadd.f32 %v1652_v56, %v1612_v9 }
 0x1e3   : > { %v1730_v32 = vadd.f32 %v1710_v60, %v1672_v59  ;;  %v1243_v60 = vadd.f32 %v2730_v17, %v1181_v53 }
 0x1e4   : > { %v1597_v6 = vpop.f32.mrf.mxu2 }
 0x1e5   : > { %v1742_v51 = vadd.f32 %v2755_v3, %v1730_v32  ;;  %v1614_v37 = vadd.f32 %v1597_v6, %v1542_v23  ;;  %v1413_v63 = vadd.f32 %v2734_v5, %v1243_v60  ;;  %v1532_v6 = vpop.f32.mrf.mxu1  ;;  %v1725_v35 = vpop.f32.mrf.mxu0 }
 0x1e7   : > { %v1750_v0 = vmax.f32 %v1742_v51, 0.0  ;;  %v1487_v47 = vadd.f32 %v2728_v14, %v1413_v63  ;;  %v1245_v14 = vadd.f32 %v2736_v29, %v1186_v28 }
 0x1e8   : > { %v1654_v43 = vpop.f32.mrf.mxu3 }
 0x1e9   : > { %v1673_v49 = vadd.f32 %v1654_v43, %v1613_v25  ;;  %v1545_v5 = vadd.f32 %v1532_v6, %v1487_v47  ;;  %v1415_v51 = vadd.f32 %v2745_v39, %v1245_v14 }
 0x1eb   : > { %v1731_v58 = vadd.f32 %v1712_v2, %v1673_v49  ;;  %v2210_v2 = vld [vmem:[%s2355_s26 + $0x30] sm:$0xf]   ;;  %v1489_v22 = vadd.f32 %v2738_v16, %v1415_v51 }
 0x1ec   : > { %v1599_v31 = vpop.f32.mrf.mxu2  ;;  %v2211_v56 = vor.u32 %v2215_v46, %v2210_v2 }
 0x1ed   : > { %v1743_v18 = vadd.f32 %v2755_v3, %v1731_v58  ;;  %v1615_v15 = vadd.f32 %v1599_v31, %v1543_v13  ;;  %v1535_v43 = vpop.f32.mrf.mxu1 }
 0x1ee   : > { %2137 = vmatmul.msk.bf16.gmra.mxu1 %vm658_vm1, %v2211_v56  ;;  %v1546_v34 = vadd.f32 %v1535_v43, %v2743_v8 }
 0x1ef   : > { %v1751_v24 = vmax.f32 %v1743_v18, 0.0 }
 0x1f0   : > { %v1657_v30 = vpop.f32.mrf.mxu3 }
 0x1f1   : > { %v1758_v4 = vpack.c.bf16 %v1751_v24, %v1750_v0  ;;  %v1674_v38 = vadd.f32 %v1657_v30, %v1614_v37  ;;  %v1727_v37 = vpop.f32.mrf.mxu0 }
 0x1f3   : > { %2138 = vmatmul.msk.bf16.vlgmr.msrb.gmra.mxu2 %vm1078_vm3, %v1758_v4  ;;  %v1732_v12 = vadd.f32 %v1715_v40, %v1674_v38 }
 0x1f4   : > { %v1602_v1 = vpop.f32.mrf.mxu2 }
 0x1f5   : > { %v1744_v42 = vadd.f32 %v2755_v3, %v1732_v12  ;;  %v1616_v17 = vadd.f32 %v1602_v1, %v1544_v54  ;;  %v1537_v29 = vpop.f32.mrf.mxu1  ;;  %v2242_v12 = vld [vmem:[%s2834_s10] ss:$0 sm:$0xff] }
 0x1f6   : > { %v1547_v10 = vadd.f32 %v1537_v29, %v1489_v22 }
 0x1f7   : > { %v1752_v52 = vmax.f32 %v1744_v42, 0.0 }
 0x1f8   : > { %v1659_v19 = vpop.f32.mrf.mxu3 }
 0x1f9   : > { %v1675_v20 = vadd.f32 %v1659_v19, %v1615_v15 }
 0x1fb   : > { %v1733_v45 = vadd.f32 %v1717_v27, %v1675_v20 }
 0x1fc   : > { %v1604_v62 = vpop.f32.mrf.mxu2 }
 0x1fd   : > { %v1745_v48 = vadd.f32 %v2755_v3, %v1733_v45  ;;  %v1617_v61 = vadd.f32 %v1604_v62, %v1545_v5  ;;  %v1792_v1 = vpop.f32.mrf.mxu1 }
 0x1ff   : > { %v1753_v26 = vmax.f32 %v1745_v48, 0.0 }
 0x200   : > { %v1662_v44 = vpop.f32.mrf.mxu3 }
 0x201   : > { %v1759_v9 = vpack.c.bf16 %v1753_v26, %v1752_v52  ;;  %v1676_v59 = vadd.f32 %v1662_v44, %v1616_v17 }
 0x203   : > { %2139 = vmatmul.msk.bf16.gmra.mxu2 %vm1078_vm3, %v1759_v9  ;;  %v1734_v25 = vadd.f32 %v1720_v21, %v1676_v59 }
 0x204   : > { %v1607_v7 = vpop.f32.mrf.mxu2 }
 0x205   : > { %v1746_v49 = vadd.f32 %v2755_v3, %v1734_v25  ;;  %v1618_v57 = vadd.f32 %v1607_v7, %v1546_v34  ;;  %v1794_v15 = vpop.f32.mrf.mxu1 }
 0x207   : > { %v1754_v31 = vmax.f32 %v1746_v49, 0.0 }
 0x208   : > { %v1664_v32 = vpop.f32.mrf.mxu3 }
 0x209   : > { %v1677_v40 = vadd.f32 %v1664_v32, %v1617_v61 }
 0x20b   : > { %v1735_v50 = vadd.f32 %v1722_v55, %v1677_v40 }
 0x20c   : > { %v1609_v24 = vpop.f32.mrf.mxu2 }
 0x20d   : > { %v1747_v58 = vadd.f32 %v2755_v3, %v1735_v50  ;;  %v1619_v11 = vadd.f32 %v1609_v24, %v1547_v10 }
 0x20f   : > { %v1755_v18 = vmax.f32 %v1747_v58, 0.0 }
 0x210   : > { %v1667_v33 = vpop.f32.mrf.mxu3 }
 0x211   : > { %v1760_v0 = vpack.c.bf16 %v1755_v18, %v1754_v31  ;;  %v1678_v23 = vadd.f32 %v1667_v33, %v1618_v57 }
 0x213   : > { %2140 = vmatmul.msk.bf16.gmra.mxu2 %vm1078_vm3, %v1760_v0  ;;  %v1736_v39 = vadd.f32 %v1725_v35, %v1678_v23 }
 0x215   : > { %v1748_v8 = vadd.f32 %v2755_v3, %v1736_v39 }
 0x217   : > { %v1756_v16 = vmax.f32 %v1748_v8, 0.0 }
 0x218   : > { %v1669_v30 = vpop.f32.mrf.mxu3 }
 0x219   : > { %v1679_v36 = vadd.f32 %v1669_v30, %v1619_v11 }
 0x21b   : > { %v1737_v4 = vadd.f32 %v1727_v37, %v1679_v36 }
 0x21d   : > { %v1749_v27 = vadd.f32 %v2755_v3, %v1737_v4 }
 0x21f   : > { %v1757_v38 = vmax.f32 %v1749_v27, 0.0 }
 0x221   : > { %v1761_v13 = vpack.c.bf16 %v1757_v38, %v1756_v16 }
 0x223   : > { %2141 = vmatmul.msk.bf16.gmra.mxu2 %vm1078_vm3, %v1761_v13  ;;  %v1797_v20 = vpop.f32.mrf.mxu1 }
 0x22b   : > { %v1799_v63 = vpop.f32.mrf.mxu1 }
 0x242   : > { %v1802_v56 = vpop.f32.mrf.mxu1 }
 0x24a   : > { %v1804_v6 = vpop.f32.mrf.mxu1 }
 0x26b   : > { %v1807_v32 = vpop.f32.mrf.mxu1 }
 0x273   : > { %v1809_v14 = vpop.f32.mrf.mxu1 }
 0x276   : > { %v1836_v41 = vpop.f32.mrf.mxu2 }
 0x277   : > { %v1837_v19 = vadd.f32 %v1836_v41, %v1792_v1 }
 0x279   : > { %v1860_v53 = vadd.f32 %v2242_v12, %v1837_v19 }
 0x27b   : > { %v1868_v3 = vmax.f32 %v1860_v53, 0.0 }
 0x27d   : > { %1876 = vst.msk [vmem:[%s2797_s21] sm:$0xff] %vm1078_vm3, %v1868_v3 }
 0x27e   : > { %v1838_v60 = vpop.f32.mrf.mxu2 }
 0x27f   : > { %v1839_v42 = vadd.f32 %v1838_v60, %v1794_v15 }
 0x281   : > { %v1861_v45 = vadd.f32 %v2242_v12, %v1839_v42 }
 0x283   : > { %v1869_v21 = vmax.f32 %v1861_v45, 0.0 }
 0x285   : > { %1877 = vst.msk [vmem:[%s2797_s21 + $0x8] sm:$0xff] %vm1078_vm3, %v1869_v21 }
 0x286   : > { %v1841_v48 = vpop.f32.mrf.mxu2 }
 0x287   : > { %v1842_v2 = vadd.f32 %v1841_v48, %v1797_v20 }
 0x289   : > { %v1862_v46 = vadd.f32 %v2242_v12, %v1842_v2 }
 0x28b   : > { %v1870_v52 = vmax.f32 %v1862_v46, 0.0 }
 0x28d   : > { %1878 = vst.msk [vmem:[%s2797_s21 + $0x10] sm:$0xff] %vm1078_vm3, %v1870_v52 }
 0x28e   : > { %v1843_v54 = vpop.f32.mrf.mxu2 }
 0x28f   : > { %v1844_v26 = vadd.f32 %v1843_v54, %v1799_v63 }
 0x291   : > { %v1863_v62 = vadd.f32 %v2242_v12, %v1844_v26 }
 0x293   : > { %v1871_v44 = vmax.f32 %v1863_v62, 0.0 }
 0x295   : > { %1879 = vst.msk [vmem:[%s2797_s21 + $0x18] sm:$0xff] %vm1078_vm3, %v1871_v44 }
 0x296   : > { %v1846_v47 = vpop.f32.mrf.mxu2 }
 0x297   : > { %v1847_v17 = vadd.f32 %v1846_v47, %v1802_v56 }
 0x299   : > { %v1864_v9 = vadd.f32 %v2242_v12, %v1847_v17 }
 0x29b   : > { %v1872_v59 = vmax.f32 %v1864_v9, 0.0 }
 0x29d   : > { %1880 = vst.msk [vmem:[%s2797_s21 + $0x20] sm:$0xff] %vm1078_vm3, %v1872_v59 }
 0x29e   : > { %v1848_v5 = vpop.f32.mrf.mxu2 }
 0x29f   : > { %v1849_v55 = vadd.f32 %v1848_v5, %v1804_v6 }
 0x2a1   : > { %v1865_v61 = vadd.f32 %v2242_v12, %v1849_v55 }
 0x2a3   : > { %v1873_v25 = vmax.f32 %v1865_v61, 0.0 }
 0x2a5   : > { %1881 = vst.msk [vmem:[%s2797_s21 + $0x28] sm:$0xff] %vm1078_vm3, %v1873_v25 }
 0x2a6   : > { %v1851_v28 = vpop.f32.mrf.mxu2 }
 0x2a7   : > { %v1852_v40 = vadd.f32 %v1851_v28, %v1807_v32 }
 0x2a9   : > { %v1866_v43 = vadd.f32 %v2242_v12, %v1852_v40 }
 0x2ab   : > { %v1874_v7 = vmax.f32 %v1866_v43, 0.0 }
 0x2ad   : > { %1882 = vst.msk [vmem:[%s2797_s21 + $0x30] sm:$0xff] %vm1078_vm3, %v1874_v7 }
 0x2ae   : > { %v1853_v49 = vpop.f32.mrf.mxu2 }
 0x2af   : > { %v1854_v50 = vadd.f32 %v1853_v49, %v1809_v14 }
 0x2b1   : > { %v1867_v51 = vadd.f32 %v2242_v12, %v1854_v50 }
 0x2b3   : > { %v1875_v58 = vmax.f32 %v1867_v51, 0.0 }
 0x2b5   : > { %1883 = vst.msk [vmem:[%s2797_s21 + $0x38] sm:$0xff] %vm1078_vm3, %v1875_v58 }
 0x2b6 PF: > { %s21_s19 = sadd.s32 1, %s2265_s19   ;;  %s2838_s17 = smov %s2261_s18 }
 0x2b7   : > { %p18_p5 = scmp.ge.s32.totalorder %s21_s19, 4   ;;  %s2839_s18 = smov %s2841_s20 }
 0x2b9   :  { %20 = sbr.rel (!%p18_p5) target bundleno = 2 (0x2), region = 111 }

</bundles_post_ra>
